<compile_context>
chip_gen: v7x
topology: tpu7x:2x2x1
jax: 0.10.0
libtpu: 0.0.40
codegen_flags: <defaults>
</compile_context>

<pallas_src>
import functools
import math

import jax
import jax.numpy as jnp
from jax.experimental import pallas as pl
from jax.experimental.pallas import tpu as pltpu


@functools.lru_cache(maxsize=None)
def _vmem_limit_bytes():
    """~3/4 of per-core VMEM capacity (v5e/v6e: 128 MiB -> 96 MiB, v7x: 64 -> 48)."""
    try:
        cap = pltpu.get_tpu_info().vmem_capacity_bytes
    except Exception:
        cap = 64 * 1024 * 1024  # conservative fallback (fits every generation)
    return min(int(cap * 3 // 4), 112 * 1024 * 1024)


def _row_tile(M, target=512):
    """Row-tile size: multiple of 8 that divides M, close to `target`.

    No forced 2-way split for small M: on single-TensorCore chips (v5e/v6e)
    splitting one full-size block only adds a grid step of pure overhead."""
    if M % 8 != 0:
        return M
    t = min(target, M)
    while t >= 8 and M % t != 0:
        t -= 8
    return t if t >= 8 else M


def _ln_or_dummy(norm, D):
    """Returns (gamma, beta, enabled). Dummies are never read when disabled."""
    if norm is None:
        z = jnp.zeros((1, D), jnp.float32)
        return z, z, False
    return norm["g"].reshape(1, D), norm["b"].reshape(1, D), True


# ----------------------------------------------------------------------------
# In-kernel helpers
# ----------------------------------------------------------------------------
def _layernorm_f32(x, g, b, eps):
    """Center-first (two-pass over the in-VMEM tile) LayerNorm in f32."""
    mean = jnp.mean(x, axis=-1, keepdims=True)
    xc = x - mean
    var = jnp.mean(xc * xc, axis=-1, keepdims=True)
    inv = jax.lax.rsqrt(var + eps)
    return xc * (inv * g) + b


# ----------------------------------------------------------------------------
# Pallas kernels
# ----------------------------------------------------------------------------
def _ffn_kernel(x_ref, res_ref, gin_ref, bin_ref, gout_ref, bout_ref,
                w1_ref, b1_ref, w2_ref, b2_ref, o_ref, *, ln_in, ln_out, eps):
    x = x_ref[...].astype(jnp.float32)
    if ln_in:                       # pre-norm: LN fused as prologue
        x = _layernorm_f32(x, gin_ref[...], bin_ref[...], eps)
    # bf16 MXU operands, f32 accumulation.
    h = jnp.dot(x.astype(jnp.bfloat16), w1_ref[...],
                preferred_element_type=jnp.float32) + b1_ref[...]
    h = jnp.maximum(h, 0.0)
    y = jnp.dot(h.astype(jnp.bfloat16), w2_ref[...],
                preferred_element_type=jnp.float32) + b2_ref[...]
    out = y + res_ref[...].astype(jnp.float32)
    if ln_out:                      # post-norm: LN fused as epilogue
        out = _layernorm_f32(out, gout_ref[...], bout_ref[...], eps)
    o_ref[...] = out.astype(o_ref.dtype)


def _mha_kernel(xq_ref, xkv_ref, res_ref,
                gq_ref, bgq_ref, gkv_ref, bgkv_ref, go_ref, bgo_ref,
                wq_ref, bq_ref, wk_ref, bk_ref, wv_ref, bv_ref, wo_ref, bo_ref,
                o_ref, *, num_heads, scale, causal, ln_q, ln_kv, ln_out, eps):
    tq = xq_ref.shape[1]
    S = xkv_ref.shape[1]
    D = xq_ref.shape[2]
    dk = D // num_heads

    xq = xq_ref[0].astype(jnp.float32)    # (tq, D)
    xkv = xkv_ref[0].astype(jnp.float32)  # (S, D)
    if ln_q:                              # pre-norm: LN fused as prologue
        xq = _layernorm_f32(xq, gq_ref[...], bgq_ref[...], eps)
    if ln_kv:
        xkv = _layernorm_f32(xkv, gkv_ref[...], bgkv_ref[...], eps)

    # Fused Q/K/V projections: bf16 operands on the MXU, f32 accumulation.
    xq_b = xq.astype(jnp.bfloat16)
    xkv_b = xkv.astype(jnp.bfloat16)
    q = jnp.dot(xq_b, wq_ref[...], preferred_element_type=jnp.float32) + bq_ref[...]
    k = jnp.dot(xkv_b, wk_ref[...], preferred_element_type=jnp.float32) + bk_ref[...]
    v = jnp.dot(xkv_b, wv_ref[...], preferred_element_type=jnp.float32) + bv_ref[...]

    if causal:
        q0 = pl.program_id(1) * tq
        row = q0 + jax.lax.broadcasted_iota(jnp.int32, (tq, S), 0)
        col = jax.lax.broadcasted_iota(jnp.int32, (tq, S), 1)
        # Large finite negative (robust even if a row were fully masked).
        bias = jnp.where(col <= row, 0.0, -1e30).astype(jnp.float32)

    # Per-head attention with accumulation straight into the output projection
    # (no concat / lane repacking; only one head's score tile live at a time).
    # TODO(synk): for large num_heads move heads onto a grid axis with an f32
    #   accumulator scratch (P3); at these shapes the unrolled loop is fine.
    acc = jnp.zeros((tq, D), jnp.float32)
    for h in range(num_heads):            # static loop, static lane slices
        sl = slice(h * dk, (h + 1) * dk)
        qh = q[:, sl].astype(jnp.bfloat16)
        kh = k[:, sl].astype(jnp.bfloat16)
        vh = v[:, sl].astype(jnp.bfloat16)
        # Q @ K^T via contracting-dim spec (no materialized transpose).
        s = jax.lax.dot_general(qh, kh, (((1,), (1,)), ((), ())),
                                preferred_element_type=jnp.float32) * scale
        if causal:
            s = s + bias
        m = jnp.max(s, axis=-1, keepdims=True)
        p = jnp.exp(s - m)
        l = jnp.sum(p, axis=-1, keepdims=True)
        oh = jnp.dot(p.astype(jnp.bfloat16), vh, preferred_element_type=jnp.float32)
        oh = oh * pl.reciprocal(l, approx=False)   # exact; (tq,1) vector only
        acc = acc + jnp.dot(oh.astype(jnp.bfloat16), wo_ref[h],
                            preferred_element_type=jnp.float32)

    out = acc + bo_ref[...] + res_ref[0].astype(jnp.float32)
    if ln_out:                            # post-norm: LN fused as epilogue
        out = _layernorm_f32(out, go_ref[...], bgo_ref[...], eps)
    o_ref[0] = out.astype(o_ref.dtype)


# ----------------------------------------------------------------------------
# Pallas wrappers
# ----------------------------------------------------------------------------
def feed_forward(x, residual, p, in_norm=None, out_norm=None, eps=1e-5):
    """[LN] -> linear1 -> ReLU -> linear2 -> +residual -> [LN], fully fused."""
    B, T, D = x.shape
    d_ff = p["w1"].shape[1]
    M = B * T
    tm = _row_tile(M)

    gin, bin_, ln_in = _ln_or_dummy(in_norm, D)
    gout, bout_, ln_out = _ln_or_dummy(out_norm, D)
    kernel = functools.partial(_ffn_kernel, ln_in=ln_in, ln_out=ln_out, eps=eps)

    out = pl.pallas_call(
        kernel,
        out_shape=jax.ShapeDtypeStruct((M, D), x.dtype),
        grid=(M // tm,),
        in_specs=[
            pl.BlockSpec((tm, D), lambda i: (i, 0)),      # x rows
            pl.BlockSpec((tm, D), lambda i: (i, 0)),      # residual rows
            pl.BlockSpec((1, D), lambda i: (0, 0)),       # in-LN gamma
            pl.BlockSpec((1, D), lambda i: (0, 0)),       # in-LN beta
            pl.BlockSpec((1, D), lambda i: (0, 0)),       # out-LN gamma
            pl.BlockSpec((1, D), lambda i: (0, 0)),       # out-LN beta
            pl.BlockSpec((D, d_ff), lambda i: (0, 0)),    # w1 (bf16, VMEM-resident)
            pl.BlockSpec((1, d_ff), lambda i: (0, 0)),    # b1
            pl.BlockSpec((d_ff, D), lambda i: (0, 0)),    # w2 (bf16)
            pl.BlockSpec((1, D), lambda i: (0, 0)),       # b2
        ],
        out_specs=pl.BlockSpec((tm, D), lambda i: (i, 0)),
        compiler_params=pltpu.CompilerParams(
            dimension_semantics=("parallel",),
            vmem_limit_bytes=_vmem_limit_bytes()),
    )(x.reshape(M, D), residual.reshape(M, D), gin, bin_, gout, bout_,
      p["w1"], p["b1"].reshape(1, d_ff), p["w2"], p["b2"].reshape(1, D))
    return out.reshape(B, T, D)


def mha(x_q, x_kv, residual, p, num_heads, causal,
        q_norm=None, kv_norm=None, out_norm=None, eps=1e-5):
    """Fused [LN] -> MultiHeadAttention -> +residual -> [LN], one pallas_call."""
    B, T, D = x_q.shape
    S = x_kv.shape[1]
    dk = D // num_heads
    tq = _row_tile(T, target=256)
    grid = (B, T // tq)

    gq, bgq, ln_q = _ln_or_dummy(q_norm, D)
    gkv, bgkv, ln_kv = _ln_or_dummy(kv_norm, D)
    go, bgo, ln_out = _ln_or_dummy(out_norm, D)

    kernel = functools.partial(
        _mha_kernel, num_heads=num_heads, scale=1.0 / math.sqrt(dk),
        causal=causal, ln_q=ln_q, ln_kv=ln_kv, ln_out=ln_out, eps=eps)

    wo3 = p["wo"].reshape(num_heads, dk, D)   # head-major for per-head accumulate

    return pl.pallas_call(
        kernel,
        out_shape=jax.ShapeDtypeStruct((B, T, D), x_q.dtype),
        grid=grid,
        in_specs=[
            pl.BlockSpec((1, tq, D), lambda b, q: (b, q, 0)),         # x_q tile
            pl.BlockSpec((1, S, D), lambda b, q: (b, 0, 0)),          # x_kv (full S)
            pl.BlockSpec((1, tq, D), lambda b, q: (b, q, 0)),         # residual tile
            pl.BlockSpec((1, D), lambda b, q: (0, 0)),                # q-LN gamma
            pl.BlockSpec((1, D), lambda b, q: (0, 0)),                # q-LN beta
            pl.BlockSpec((1, D), lambda b, q: (0, 0)),                # kv-LN gamma
            pl.BlockSpec((1, D), lambda b, q: (0, 0)),                # kv-LN beta
            pl.BlockSpec((1, D), lambda b, q: (0, 0)),                # out-LN gamma
            pl.BlockSpec((1, D), lambda b, q: (0, 0)),                # out-LN beta
            pl.BlockSpec((D, D), lambda b, q: (0, 0)),                # wq (bf16)
            pl.BlockSpec((1, D), lambda b, q: (0, 0)),                # bq
            pl.BlockSpec((D, D), lambda b, q: (0, 0)),                # wk (bf16)
            pl.BlockSpec((1, D), lambda b, q: (0, 0)),                # bk
            pl.BlockSpec((D, D), lambda b, q: (0, 0)),                # wv (bf16)
            pl.BlockSpec((1, D), lambda b, q: (0, 0)),                # bv
            pl.BlockSpec((num_heads, dk, D), lambda b, q: (0, 0, 0)),  # wo (H,dk,D) bf16
            pl.BlockSpec((1, D), lambda b, q: (0, 0)),                # bo
        ],
        out_specs=pl.BlockSpec((1, tq, D), lambda b, q: (b, q, 0)),
        compiler_params=pltpu.CompilerParams(
            dimension_semantics=("parallel", "parallel"),
            vmem_limit_bytes=_vmem_limit_bytes()),
    )(x_q, x_kv, residual, gq, bgq, gkv, bgkv, go, bgo,
      p["wq"], p["bq"].reshape(1, D), p["wk"], p["bk"].reshape(1, D),
      p["wv"], p["bv"].reshape(1, D), wo3, p["bo"].reshape(1, D))


# ----------------------------------------------------------------------------
# DecoderBlock forward (3 fused pallas_calls per block in either mode)
# ----------------------------------------------------------------------------
def decoder_block(X, encoded_info, params, num_heads, pre_norm):
    n = params["norm"]
    if pre_norm:
        # X = X + masked_mha(LN0(X), LN0(X))
        X = mha(X, X, X, params["masked_mha"], num_heads, causal=True,
                q_norm=n[0], kv_norm=n[0])
        # X = X + cross_mha(LN1(X), LN2(encoded_info))
        X = mha(X, encoded_info, X, params["cross_mha"], num_heads, causal=False,
                q_norm=n[1], kv_norm=n[2])
        # X = X + ff(LN3(X))
        X = feed_forward(X, X, params["ff"], in_norm=n[3])
    else:
        # X = LN0(X + masked_mha(X, X))
        X = mha(X, X, X, params["masked_mha"], num_heads, causal=True,
                out_norm=n[0])
        # X = LN1(X + cross_mha(X, encoded_info))
        X = mha(X, encoded_info, X, params["cross_mha"], num_heads, causal=False,
                out_norm=n[1])
        # X = LN2(X + ff(X))
        X = feed_forward(X, X, params["ff"], out_norm=n[2])
    return X


# ----------------------------------------------------------------------------
# Deterministic parameter init (matching the module's shapes; bf16 weights)
# ----------------------------------------------------------------------------
def init_params(key, num_heads, d_model, d_ff):
    dk = d_model // num_heads

    def init_lin(k, din, dout, scale=0.1):
        kw, kb = jax.random.split(k)
        w = jax.random.normal(kw, (din, dout), jnp.float32) * scale
        b = jax.random.normal(kb, (dout,), jnp.float32) * scale
        # bf16 weights in HBM (half VMEM residency + native bf16 MXU path);
        # biases stay f32 (added to f32 accumulators).
        return w.astype(jnp.bfloat16), b

    keys = jax.random.split(key, 12)

    def init_mha(k4):
        wq, bq = init_lin(k4[0], d_model, num_heads * dk)
        wk, bk = init_lin(k4[1], d_model, num_heads * dk)
        wv, bv = init_lin(k4[2], d_model, num_heads * dk)
        wo, bo = init_lin(k4[3], num_heads * dk, d_model)
        return dict(wq=wq, bq=bq, wk=wk, bk=bk, wv=wv, bv=bv, wo=wo, bo=bo)

    params = dict(
        masked_mha=init_mha(keys[0:4]),
        cross_mha=init_mha(keys[4:8]),
        norm=[dict(g=jnp.ones((d_model,), jnp.float32),
                   b=jnp.zeros((d_model,), jnp.float32)) for _ in range(4)],
    )
    w1, b1 = init_lin(keys[8], d_model, d_ff)
    w2, b2 = init_lin(keys[9], d_ff, d_model)
    params["ff"] = dict(w1=w1, b1=b1, w2=w2, b2=b2)
    return params


# ----------------------------------------------------------------------------
if __name__ == "__main__":
    B, T, d_model, num_heads, d_ff = 2, 8, 32, 4, 64  # context_size = T = 8

    key = jax.random.PRNGKey(0)
    kx, ke, kp = jax.random.split(key, 3)
    X = jax.random.normal(kx, (B, T, d_model), jnp.float32)
    encoded_info = jax.random.normal(ke, (B, T, d_model), jnp.float32)
    params = init_params(kp, num_heads, d_model, d_ff)

    out_pre = jax.block_until_ready(
        decoder_block(X, encoded_info, params, num_heads, pre_norm=True))
    out_post = jax.block_until_ready(
        decoder_block(X, encoded_info, params, num_heads, pre_norm=False))

    assert out_pre.shape == (B, T, d_model) and bool(jnp.all(jnp.isfinite(out_pre)))
    assert out_post.shape == (B, T, d_model) and bool(jnp.all(jnp.isfinite(out_post)))
    print("KERNEL_OK")
</pallas_src>

<mosaic_0001>
module attributes {stable_mosaic.version = 11 : i64} {
  func.func @_mha_kernel(%arg0: i32, %arg1: i32, %arg2: memref<1x8x32xf32, #tpu.memory_space<vmem>>, %arg3: memref<1x8x32xf32, #tpu.memory_space<vmem>>, %arg4: memref<1x8x32xf32, #tpu.memory_space<vmem>>, %arg5: memref<1x32xf32, #tpu.memory_space<vmem>>, %arg6: memref<1x32xf32, #tpu.memory_space<vmem>>, %arg7: memref<1x32xf32, #tpu.memory_space<vmem>>, %arg8: memref<1x32xf32, #tpu.memory_space<vmem>>, %arg9: memref<1x32xf32, #tpu.memory_space<vmem>>, %arg10: memref<1x32xf32, #tpu.memory_space<vmem>>, %arg11: memref<32x32xbf16, #tpu.memory_space<vmem>>, %arg12: memref<1x32xf32, #tpu.memory_space<vmem>>, %arg13: memref<32x32xbf16, #tpu.memory_space<vmem>>, %arg14: memref<1x32xf32, #tpu.memory_space<vmem>>, %arg15: memref<32x32xbf16, #tpu.memory_space<vmem>>, %arg16: memref<1x32xf32, #tpu.memory_space<vmem>>, %arg17: memref<4x8x32xbf16, #tpu.memory_space<vmem>>, %arg18: memref<1x32xf32, #tpu.memory_space<vmem>>, %arg19: memref<1x8x32xf32, #tpu.memory_space<vmem>>) attributes {dimension_semantics = [#tpu.dimension_semantics<parallel>, #tpu.dimension_semantics<parallel>], iteration_bounds = array<i64: 2, 1>, scalar_prefetch = 0 : i64, scratch_operands = 0 : i64, tpu.core_type = #tpu.core_type<tc>, window_params = [{transform_indices = @transform_0, window_bounds = array<i64: 1, 8, 32>}, {transform_indices = @transform_1, window_bounds = array<i64: 1, 8, 32>}, {transform_indices = @transform_2, window_bounds = array<i64: 1, 8, 32>}, {pipeline_mode = #tpu.pipeline_mode<synchronous>, transform_indices = @transform_3, window_bounds = array<i64: 1, 32>}, {pipeline_mode = #tpu.pipeline_mode<synchronous>, transform_indices = @transform_4, window_bounds = array<i64: 1, 32>}, {pipeline_mode = #tpu.pipeline_mode<synchronous>, transform_indices = @transform_5, window_bounds = array<i64: 1, 32>}, {pipeline_mode = #tpu.pipeline_mode<synchronous>, transform_indices = @transform_6, window_bounds = array<i64: 1, 32>}, {pipeline_mode = #tpu.pipeline_mode<synchronous>, transform_indices = @transform_7, window_bounds = array<i64: 1, 32>}, {pipeline_mode = #tpu.pipeline_mode<synchronous>, transform_indices = @transform_8, window_bounds = array<i64: 1, 32>}, {pipeline_mode = #tpu.pipeline_mode<synchronous>, transform_indices = @transform_9, window_bounds = array<i64: 32, 32>}, {pipeline_mode = #tpu.pipeline_mode<synchronous>, transform_indices = @transform_10, window_bounds = array<i64: 1, 32>}, {pipeline_mode = #tpu.pipeline_mode<synchronous>, transform_indices = @transform_11, window_bounds = array<i64: 32, 32>}, {pipeline_mode = #tpu.pipeline_mode<synchronous>, transform_indices = @transform_12, window_bounds = array<i64: 1, 32>}, {pipeline_mode = #tpu.pipeline_mode<synchronous>, transform_indices = @transform_13, window_bounds = array<i64: 32, 32>}, {pipeline_mode = #tpu.pipeline_mode<synchronous>, transform_indices = @transform_14, window_bounds = array<i64: 1, 32>}, {pipeline_mode = #tpu.pipeline_mode<synchronous>, transform_indices = @transform_15, window_bounds = array<i64: 4, 8, 32>}, {pipeline_mode = #tpu.pipeline_mode<synchronous>, transform_indices = @transform_16, window_bounds = array<i64: 1, 32>}, {transform_indices = @transform_17, window_bounds = array<i64: 1, 8, 32>}]} {
    %c0 = arith.constant 0 : index
    %c0_0 = arith.constant 0 : index
    %c0_1 = arith.constant 0 : index
    %0 = vector.load %arg2[%c0, %c0_0, %c0_1] : memref<1x8x32xf32, #tpu.memory_space<vmem>>, vector<1x8x32xf32>
    %1 = vector.shape_cast %0 : vector<1x8x32xf32> to vector<8x32xf32>
    %c0_2 = arith.constant 0 : index
    %c0_3 = arith.constant 0 : index
    %c0_4 = arith.constant 0 : index
    %2 = vector.load %arg3[%c0_2, %c0_3, %c0_4] : memref<1x8x32xf32, #tpu.memory_space<vmem>>, vector<1x8x32xf32>
    %3 = vector.shape_cast %2 : vector<1x8x32xf32> to vector<8x32xf32>
    %c0_5 = arith.constant 0 : index
    %c0_6 = arith.constant 0 : index
    %4 = vector.load %arg5[%c0_5, %c0_6] : memref<1x32xf32, #tpu.memory_space<vmem>>, vector<1x32xf32>
    %c0_7 = arith.constant 0 : index
    %c0_8 = arith.constant 0 : index
    %5 = vector.load %arg6[%c0_7, %c0_8] : memref<1x32xf32, #tpu.memory_space<vmem>>, vector<1x32xf32>
    %cst = arith.constant dense<0.000000e+00> : vector<8xf32>
    %6 = vector.multi_reduction <add>, %1, %cst [1] : vector<8x32xf32> to vector<8xf32>
    %7 = vector.shape_cast %6 : vector<8xf32> to vector<8x1xf32>
    %cst_9 = arith.constant 3.200000e+01 : f32
    %8 = vector.broadcast %cst_9 : f32 to vector<8x1xf32>
    %9 = arith.divf %7, %8 : vector<8x1xf32>
    %10 = vector.broadcast %9 : vector<8x1xf32> to vector<8x32xf32>
    %11 = arith.subf %1, %10 : vector<8x32xf32>
    %12 = arith.mulf %11, %11 : vector<8x32xf32>
    %cst_10 = arith.constant dense<0.000000e+00> : vector<8xf32>
    %13 = vector.multi_reduction <add>, %12, %cst_10 [1] : vector<8x32xf32> to vector<8xf32>
    %14 = vector.shape_cast %13 : vector<8xf32> to vector<8x1xf32>
    %cst_11 = arith.constant 3.200000e+01 : f32
    %15 = vector.broadcast %cst_11 : f32 to vector<8x1xf32>
    %16 = arith.divf %14, %15 : vector<8x1xf32>
    %cst_12 = arith.constant 9.99999974E-6 : f32
    %17 = vector.broadcast %cst_12 : f32 to vector<8x1xf32>
    %18 = arith.addf %16, %17 : vector<8x1xf32>
    %19 = math.rsqrt %18 : vector<8x1xf32>
    %20 = vector.broadcast %19 : vector<8x1xf32> to vector<8x32xf32>
    %21 = vector.broadcast %4 : vector<1x32xf32> to vector<8x32xf32>
    %22 = arith.mulf %20, %21 : vector<8x32xf32>
    %23 = arith.mulf %11, %22 : vector<8x32xf32>
    %24 = vector.broadcast %5 : vector<1x32xf32> to vector<8x32xf32>
    %25 = arith.addf %23, %24 : vector<8x32xf32>
    %c0_13 = arith.constant 0 : index
    %c0_14 = arith.constant 0 : index
    %26 = vector.load %arg7[%c0_13, %c0_14] : memref<1x32xf32, #tpu.memory_space<vmem>>, vector<1x32xf32>
    %c0_15 = arith.constant 0 : index
    %c0_16 = arith.constant 0 : index
    %27 = vector.load %arg8[%c0_15, %c0_16] : memref<1x32xf32, #tpu.memory_space<vmem>>, vector<1x32xf32>
    %cst_17 = arith.constant dense<0.000000e+00> : vector<8xf32>
    %28 = vector.multi_reduction <add>, %3, %cst_17 [1] : vector<8x32xf32> to vector<8xf32>
    %29 = vector.shape_cast %28 : vector<8xf32> to vector<8x1xf32>
    %cst_18 = arith.constant 3.200000e+01 : f32
    %30 = vector.broadcast %cst_18 : f32 to vector<8x1xf32>
    %31 = arith.divf %29, %30 : vector<8x1xf32>
    %32 = vector.broadcast %31 : vector<8x1xf32> to vector<8x32xf32>
    %33 = arith.subf %3, %32 : vector<8x32xf32>
    %34 = arith.mulf %33, %33 : vector<8x32xf32>
    %cst_19 = arith.constant dense<0.000000e+00> : vector<8xf32>
    %35 = vector.multi_reduction <add>, %34, %cst_19 [1] : vector<8x32xf32> to vector<8xf32>
    %36 = vector.shape_cast %35 : vector<8xf32> to vector<8x1xf32>
    %cst_20 = arith.constant 3.200000e+01 : f32
    %37 = vector.broadcast %cst_20 : f32 to vector<8x1xf32>
    %38 = arith.divf %36, %37 : vector<8x1xf32>
    %cst_21 = arith.constant 9.99999974E-6 : f32
    %39 = vector.broadcast %cst_21 : f32 to vector<8x1xf32>
    %40 = arith.addf %38, %39 : vector<8x1xf32>
    %41 = math.rsqrt %40 : vector<8x1xf32>
    %42 = vector.broadcast %41 : vector<8x1xf32> to vector<8x32xf32>
    %43 = vector.broadcast %26 : vector<1x32xf32> to vector<8x32xf32>
    %44 = arith.mulf %42, %43 : vector<8x32xf32>
    %45 = arith.mulf %33, %44 : vector<8x32xf32>
    %46 = vector.broadcast %27 : vector<1x32xf32> to vector<8x32xf32>
    %47 = arith.addf %45, %46 : vector<8x32xf32>
    %48 = arith.truncf %25 : vector<8x32xf32> to vector<8x32xbf16>
    %49 = arith.truncf %47 : vector<8x32xf32> to vector<8x32xbf16>
    %c0_22 = arith.constant 0 : index
    %c0_23 = arith.constant 0 : index
    %50 = vector.load %arg11[%c0_22, %c0_23] : memref<32x32xbf16, #tpu.memory_space<vmem>>, vector<32x32xbf16>
    %cst_24 = arith.constant dense<0.000000e+00> : vector<8x32xf32>
    %51 = tpu.matmul %48, %50, %cst_24 {dimension_numbers = #tpu.dot_dimension_numbers<[1], [0], [0], [1], [0, 0, 1, 1], [], []>} : vector<8x32xbf16>, vector<32x32xbf16>, vector<8x32xf32> -> vector<8x32xf32>
    %c0_25 = arith.constant 0 : index
    %c0_26 = arith.constant 0 : index
    %52 = vector.load %arg12[%c0_25, %c0_26] : memref<1x32xf32, #tpu.memory_space<vmem>>, vector<1x32xf32>
    %53 = vector.broadcast %52 : vector<1x32xf32> to vector<8x32xf32>
    %54 = arith.addf %51, %53 : vector<8x32xf32>
    %c0_27 = arith.constant 0 : index
    %c0_28 = arith.constant 0 : index
    %55 = vector.load %arg13[%c0_27, %c0_28] : memref<32x32xbf16, #tpu.memory_space<vmem>>, vector<32x32xbf16>
    %cst_29 = arith.constant dense<0.000000e+00> : vector<8x32xf32>
    %56 = tpu.matmul %49, %55, %cst_29 {dimension_numbers = #tpu.dot_dimension_numbers<[1], [0], [0], [1], [0, 0, 1, 1], [], []>} : vector<8x32xbf16>, vector<32x32xbf16>, vector<8x32xf32> -> vector<8x32xf32>
    %c0_30 = arith.constant 0 : index
    %c0_31 = arith.constant 0 : index
    %57 = vector.load %arg14[%c0_30, %c0_31] : memref<1x32xf32, #tpu.memory_space<vmem>>, vector<1x32xf32>
    %58 = vector.broadcast %57 : vector<1x32xf32> to vector<8x32xf32>
    %59 = arith.addf %56, %58 : vector<8x32xf32>
    %c0_32 = arith.constant 0 : index
    %c0_33 = arith.constant 0 : index
    %60 = vector.load %arg15[%c0_32, %c0_33] : memref<32x32xbf16, #tpu.memory_space<vmem>>, vector<32x32xbf16>
    %cst_34 = arith.constant dense<0.000000e+00> : vector<8x32xf32>
    %61 = tpu.matmul %49, %60, %cst_34 {dimension_numbers = #tpu.dot_dimension_numbers<[1], [0], [0], [1], [0, 0, 1, 1], [], []>} : vector<8x32xbf16>, vector<32x32xbf16>, vector<8x32xf32> -> vector<8x32xf32>
    %c0_35 = arith.constant 0 : index
    %c0_36 = arith.constant 0 : index
    %62 = vector.load %arg16[%c0_35, %c0_36] : memref<1x32xf32, #tpu.memory_space<vmem>>, vector<1x32xf32>
    %63 = vector.broadcast %62 : vector<1x32xf32> to vector<8x32xf32>
    %64 = arith.addf %61, %63 : vector<8x32xf32>
    %c8_i32 = arith.constant 8 : i32
    %65 = arith.muli %arg1, %c8_i32 : i32
    %66 = tpu.iota {dimensions = array<i32: 0>} : vector<8x8xi32>
    %67 = vector.broadcast %65 : i32 to vector<8x8xi32>
    %68 = arith.addi %67, %66 : vector<8x8xi32>
    %69 = tpu.iota {dimensions = array<i32: 1>} : vector<8x8xi32>
    %70 = arith.cmpi sle, %69, %68 : vector<8x8xi32>
    %cst_37 = arith.constant 0.000000e+00 : f32
    %cst_38 = arith.constant -1.000000e+30 : f32
    %71 = vector.broadcast %cst_37 : f32 to vector<8x8xf32>
    %72 = vector.broadcast %cst_38 : f32 to vector<8x8xf32>
    %73 = arith.select %70, %71, %72 : vector<8x8xi1>, vector<8x8xf32>
    %cst_39 = arith.constant 0.000000e+00 : f32
    %74 = vector.broadcast %cst_39 : f32 to vector<8x32xf32>
    %75 = vector.extract_strided_slice %54 {offsets = [0, 0], sizes = [8, 8], strides = [1, 1]} : vector<8x32xf32> to vector<8x8xf32>
    %76 = arith.truncf %75 : vector<8x8xf32> to vector<8x8xbf16>
    %77 = vector.extract_strided_slice %59 {offsets = [0, 0], sizes = [8, 8], strides = [1, 1]} : vector<8x32xf32> to vector<8x8xf32>
    %78 = arith.truncf %77 : vector<8x8xf32> to vector<8x8xbf16>
    %79 = vector.extract_strided_slice %64 {offsets = [0, 0], sizes = [8, 8], strides = [1, 1]} : vector<8x32xf32> to vector<8x8xf32>
    %80 = arith.truncf %79 : vector<8x8xf32> to vector<8x8xbf16>
    %cst_40 = arith.constant dense<0.000000e+00> : vector<8x8xf32>
    %81 = tpu.matmul %76, %78, %cst_40 {dimension_numbers = #tpu.dot_dimension_numbers<[1], [1], [0], [0], [0, 0, 1, 0], [], []>} : vector<8x8xbf16>, vector<8x8xbf16>, vector<8x8xf32> -> vector<8x8xf32>
    %cst_41 = arith.constant 0.353553385 : f32
    %82 = vector.broadcast %cst_41 : f32 to vector<8x8xf32>
    %83 = arith.mulf %81, %82 : vector<8x8xf32>
    %84 = arith.addf %83, %73 : vector<8x8xf32>
    %cst_42 = arith.constant dense<0xFF800000> : vector<8xf32>
    %85 = vector.multi_reduction <maximumf>, %84, %cst_42 [1] : vector<8x8xf32> to vector<8xf32>
    %86 = vector.shape_cast %85 : vector<8xf32> to vector<8x1xf32>
    %87 = vector.broadcast %86 : vector<8x1xf32> to vector<8x8xf32>
    %88 = arith.subf %84, %87 : vector<8x8xf32>
    %89 = math.exp %88 : vector<8x8xf32>
    %cst_43 = arith.constant dense<0.000000e+00> : vector<8xf32>
    %90 = vector.multi_reduction <add>, %89, %cst_43 [1] : vector<8x8xf32> to vector<8xf32>
    %91 = vector.shape_cast %90 : vector<8xf32> to vector<8x1xf32>
    %92 = arith.truncf %89 : vector<8x8xf32> to vector<8x8xbf16>
    %cst_44 = arith.constant dense<0.000000e+00> : vector<8x8xf32>
    %93 = tpu.matmul %92, %80, %cst_44 {dimension_numbers = #tpu.dot_dimension_numbers<[1], [0], [0], [1], [0, 0, 1, 1], [], []>} : vector<8x8xbf16>, vector<8x8xbf16>, vector<8x8xf32> -> vector<8x8xf32>
    %94 = tpu.reciprocal %91 : vector<8x1xf32> -> vector<8x1xf32>
    %95 = vector.broadcast %94 : vector<8x1xf32> to vector<8x8xf32>
    %96 = arith.mulf %93, %95 : vector<8x8xf32>
    %97 = arith.truncf %96 : vector<8x8xf32> to vector<8x8xbf16>
    %c0_45 = arith.constant 0 : index
    %c0_46 = arith.constant 0 : index
    %c0_47 = arith.constant 0 : index
    %98 = vector.load %arg17[%c0_45, %c0_46, %c0_47] : memref<4x8x32xbf16, #tpu.memory_space<vmem>>, vector<1x8x32xbf16>
    %99 = vector.shape_cast %98 : vector<1x8x32xbf16> to vector<8x32xbf16>
    %cst_48 = arith.constant dense<0.000000e+00> : vector<8x32xf32>
    %100 = tpu.matmul %97, %99, %cst_48 {dimension_numbers = #tpu.dot_dimension_numbers<[1], [0], [0], [1], [0, 0, 1, 1], [], []>} : vector<8x8xbf16>, vector<8x32xbf16>, vector<8x32xf32> -> vector<8x32xf32>
    %101 = arith.addf %74, %100 : vector<8x32xf32>
    %102 = vector.extract_strided_slice %54 {offsets = [0, 8], sizes = [8, 8], strides = [1, 1]} : vector<8x32xf32> to vector<8x8xf32>
    %103 = arith.truncf %102 : vector<8x8xf32> to vector<8x8xbf16>
    %104 = vector.extract_strided_slice %59 {offsets = [0, 8], sizes = [8, 8], strides = [1, 1]} : vector<8x32xf32> to vector<8x8xf32>
    %105 = arith.truncf %104 : vector<8x8xf32> to vector<8x8xbf16>
    %106 = vector.extract_strided_slice %64 {offsets = [0, 8], sizes = [8, 8], strides = [1, 1]} : vector<8x32xf32> to vector<8x8xf32>
    %107 = arith.truncf %106 : vector<8x8xf32> to vector<8x8xbf16>
    %cst_49 = arith.constant dense<0.000000e+00> : vector<8x8xf32>
    %108 = tpu.matmul %103, %105, %cst_49 {dimension_numbers = #tpu.dot_dimension_numbers<[1], [1], [0], [0], [0, 0, 1, 0], [], []>} : vector<8x8xbf16>, vector<8x8xbf16>, vector<8x8xf32> -> vector<8x8xf32>
    %cst_50 = arith.constant 0.353553385 : f32
    %109 = vector.broadcast %cst_50 : f32 to vector<8x8xf32>
    %110 = arith.mulf %108, %109 : vector<8x8xf32>
    %111 = arith.addf %110, %73 : vector<8x8xf32>
    %cst_51 = arith.constant dense<0xFF800000> : vector<8xf32>
    %112 = vector.multi_reduction <maximumf>, %111, %cst_51 [1] : vector<8x8xf32> to vector<8xf32>
    %113 = vector.shape_cast %112 : vector<8xf32> to vector<8x1xf32>
    %114 = vector.broadcast %113 : vector<8x1xf32> to vector<8x8xf32>
    %115 = arith.subf %111, %114 : vector<8x8xf32>
    %116 = math.exp %115 : vector<8x8xf32>
    %cst_52 = arith.constant dense<0.000000e+00> : vector<8xf32>
    %117 = vector.multi_reduction <add>, %116, %cst_52 [1] : vector<8x8xf32> to vector<8xf32>
    %118 = vector.shape_cast %117 : vector<8xf32> to vector<8x1xf32>
    %119 = arith.truncf %116 : vector<8x8xf32> to vector<8x8xbf16>
    %cst_53 = arith.constant dense<0.000000e+00> : vector<8x8xf32>
    %120 = tpu.matmul %119, %107, %cst_53 {dimension_numbers = #tpu.dot_dimension_numbers<[1], [0], [0], [1], [0, 0, 1, 1], [], []>} : vector<8x8xbf16>, vector<8x8xbf16>, vector<8x8xf32> -> vector<8x8xf32>
    %121 = tpu.reciprocal %118 : vector<8x1xf32> -> vector<8x1xf32>
    %122 = vector.broadcast %121 : vector<8x1xf32> to vector<8x8xf32>
    %123 = arith.mulf %120, %122 : vector<8x8xf32>
    %124 = arith.truncf %123 : vector<8x8xf32> to vector<8x8xbf16>
    %c1 = arith.constant 1 : index
    %c0_54 = arith.constant 0 : index
    %c0_55 = arith.constant 0 : index
    %125 = vector.load %arg17[%c1, %c0_54, %c0_55] : memref<4x8x32xbf16, #tpu.memory_space<vmem>>, vector<1x8x32xbf16>
    %126 = vector.shape_cast %125 : vector<1x8x32xbf16> to vector<8x32xbf16>
    %cst_56 = arith.constant dense<0.000000e+00> : vector<8x32xf32>
    %127 = tpu.matmul %124, %126, %cst_56 {dimension_numbers = #tpu.dot_dimension_numbers<[1], [0], [0], [1], [0, 0, 1, 1], [], []>} : vector<8x8xbf16>, vector<8x32xbf16>, vector<8x32xf32> -> vector<8x32xf32>
    %128 = arith.addf %101, %127 : vector<8x32xf32>
    %129 = vector.extract_strided_slice %54 {offsets = [0, 16], sizes = [8, 8], strides = [1, 1]} : vector<8x32xf32> to vector<8x8xf32>
    %130 = arith.truncf %129 : vector<8x8xf32> to vector<8x8xbf16>
    %131 = vector.extract_strided_slice %59 {offsets = [0, 16], sizes = [8, 8], strides = [1, 1]} : vector<8x32xf32> to vector<8x8xf32>
    %132 = arith.truncf %131 : vector<8x8xf32> to vector<8x8xbf16>
    %133 = vector.extract_strided_slice %64 {offsets = [0, 16], sizes = [8, 8], strides = [1, 1]} : vector<8x32xf32> to vector<8x8xf32>
    %134 = arith.truncf %133 : vector<8x8xf32> to vector<8x8xbf16>
    %cst_57 = arith.constant dense<0.000000e+00> : vector<8x8xf32>
    %135 = tpu.matmul %130, %132, %cst_57 {dimension_numbers = #tpu.dot_dimension_numbers<[1], [1], [0], [0], [0, 0, 1, 0], [], []>} : vector<8x8xbf16>, vector<8x8xbf16>, vector<8x8xf32> -> vector<8x8xf32>
    %cst_58 = arith.constant 0.353553385 : f32
    %136 = vector.broadcast %cst_58 : f32 to vector<8x8xf32>
    %137 = arith.mulf %135, %136 : vector<8x8xf32>
    %138 = arith.addf %137, %73 : vector<8x8xf32>
    %cst_59 = arith.constant dense<0xFF800000> : vector<8xf32>
    %139 = vector.multi_reduction <maximumf>, %138, %cst_59 [1] : vector<8x8xf32> to vector<8xf32>
    %140 = vector.shape_cast %139 : vector<8xf32> to vector<8x1xf32>
    %141 = vector.broadcast %140 : vector<8x1xf32> to vector<8x8xf32>
    %142 = arith.subf %138, %141 : vector<8x8xf32>
    %143 = math.exp %142 : vector<8x8xf32>
    %cst_60 = arith.constant dense<0.000000e+00> : vector<8xf32>
    %144 = vector.multi_reduction <add>, %143, %cst_60 [1] : vector<8x8xf32> to vector<8xf32>
    %145 = vector.shape_cast %144 : vector<8xf32> to vector<8x1xf32>
    %146 = arith.truncf %143 : vector<8x8xf32> to vector<8x8xbf16>
    %cst_61 = arith.constant dense<0.000000e+00> : vector<8x8xf32>
    %147 = tpu.matmul %146, %134, %cst_61 {dimension_numbers = #tpu.dot_dimension_numbers<[1], [0], [0], [1], [0, 0, 1, 1], [], []>} : vector<8x8xbf16>, vector<8x8xbf16>, vector<8x8xf32> -> vector<8x8xf32>
    %148 = tpu.reciprocal %145 : vector<8x1xf32> -> vector<8x1xf32>
    %149 = vector.broadcast %148 : vector<8x1xf32> to vector<8x8xf32>
    %150 = arith.mulf %147, %149 : vector<8x8xf32>
    %151 = arith.truncf %150 : vector<8x8xf32> to vector<8x8xbf16>
    %c2 = arith.constant 2 : index
    %c0_62 = arith.constant 0 : index
    %c0_63 = arith.constant 0 : index
    %152 = vector.load %arg17[%c2, %c0_62, %c0_63] : memref<4x8x32xbf16, #tpu.memory_space<vmem>>, vector<1x8x32xbf16>
    %153 = vector.shape_cast %152 : vector<1x8x32xbf16> to vector<8x32xbf16>
    %cst_64 = arith.constant dense<0.000000e+00> : vector<8x32xf32>
    %154 = tpu.matmul %151, %153, %cst_64 {dimension_numbers = #tpu.dot_dimension_numbers<[1], [0], [0], [1], [0, 0, 1, 1], [], []>} : vector<8x8xbf16>, vector<8x32xbf16>, vector<8x32xf32> -> vector<8x32xf32>
    %155 = arith.addf %128, %154 : vector<8x32xf32>
    %156 = vector.extract_strided_slice %54 {offsets = [0, 24], sizes = [8, 8], strides = [1, 1]} : vector<8x32xf32> to vector<8x8xf32>
    %157 = arith.truncf %156 : vector<8x8xf32> to vector<8x8xbf16>
    %158 = vector.extract_strided_slice %59 {offsets = [0, 24], sizes = [8, 8], strides = [1, 1]} : vector<8x32xf32> to vector<8x8xf32>
    %159 = arith.truncf %158 : vector<8x8xf32> to vector<8x8xbf16>
    %160 = vector.extract_strided_slice %64 {offsets = [0, 24], sizes = [8, 8], strides = [1, 1]} : vector<8x32xf32> to vector<8x8xf32>
    %161 = arith.truncf %160 : vector<8x8xf32> to vector<8x8xbf16>
    %cst_65 = arith.constant dense<0.000000e+00> : vector<8x8xf32>
    %162 = tpu.matmul %157, %159, %cst_65 {dimension_numbers = #tpu.dot_dimension_numbers<[1], [1], [0], [0], [0, 0, 1, 0], [], []>} : vector<8x8xbf16>, vector<8x8xbf16>, vector<8x8xf32> -> vector<8x8xf32>
    %cst_66 = arith.constant 0.353553385 : f32
    %163 = vector.broadcast %cst_66 : f32 to vector<8x8xf32>
    %164 = arith.mulf %162, %163 : vector<8x8xf32>
    %165 = arith.addf %164, %73 : vector<8x8xf32>
    %cst_67 = arith.constant dense<0xFF800000> : vector<8xf32>
    %166 = vector.multi_reduction <maximumf>, %165, %cst_67 [1] : vector<8x8xf32> to vector<8xf32>
    %167 = vector.shape_cast %166 : vector<8xf32> to vector<8x1xf32>
    %168 = vector.broadcast %167 : vector<8x1xf32> to vector<8x8xf32>
    %169 = arith.subf %165, %168 : vector<8x8xf32>
    %170 = math.exp %169 : vector<8x8xf32>
    %cst_68 = arith.constant dense<0.000000e+00> : vector<8xf32>
    %171 = vector.multi_reduction <add>, %170, %cst_68 [1] : vector<8x8xf32> to vector<8xf32>
    %172 = vector.shape_cast %171 : vector<8xf32> to vector<8x1xf32>
    %173 = arith.truncf %170 : vector<8x8xf32> to vector<8x8xbf16>
    %cst_69 = arith.constant dense<0.000000e+00> : vector<8x8xf32>
    %174 = tpu.matmul %173, %161, %cst_69 {dimension_numbers = #tpu.dot_dimension_numbers<[1], [0], [0], [1], [0, 0, 1, 1], [], []>} : vector<8x8xbf16>, vector<8x8xbf16>, vector<8x8xf32> -> vector<8x8xf32>
    %175 = tpu.reciprocal %172 : vector<8x1xf32> -> vector<8x1xf32>
    %176 = vector.broadcast %175 : vector<8x1xf32> to vector<8x8xf32>
    %177 = arith.mulf %174, %176 : vector<8x8xf32>
    %178 = arith.truncf %177 : vector<8x8xf32> to vector<8x8xbf16>
    %c3 = arith.constant 3 : index
    %c0_70 = arith.constant 0 : index
    %c0_71 = arith.constant 0 : index
    %179 = vector.load %arg17[%c3, %c0_70, %c0_71] : memref<4x8x32xbf16, #tpu.memory_space<vmem>>, vector<1x8x32xbf16>
    %180 = vector.shape_cast %179 : vector<1x8x32xbf16> to vector<8x32xbf16>
    %cst_72 = arith.constant dense<0.000000e+00> : vector<8x32xf32>
    %181 = tpu.matmul %178, %180, %cst_72 {dimension_numbers = #tpu.dot_dimension_numbers<[1], [0], [0], [1], [0, 0, 1, 1], [], []>} : vector<8x8xbf16>, vector<8x32xbf16>, vector<8x32xf32> -> vector<8x32xf32>
    %182 = arith.addf %155, %181 : vector<8x32xf32>
    %c0_73 = arith.constant 0 : index
    %c0_74 = arith.constant 0 : index
    %183 = vector.load %arg18[%c0_73, %c0_74] : memref<1x32xf32, #tpu.memory_space<vmem>>, vector<1x32xf32>
    %184 = vector.broadcast %183 : vector<1x32xf32> to vector<8x32xf32>
    %185 = arith.addf %182, %184 : vector<8x32xf32>
    %c0_75 = arith.constant 0 : index
    %c0_76 = arith.constant 0 : index
    %c0_77 = arith.constant 0 : index
    %186 = vector.load %arg4[%c0_75, %c0_76, %c0_77] : memref<1x8x32xf32, #tpu.memory_space<vmem>>, vector<1x8x32xf32>
    %187 = vector.shape_cast %186 : vector<1x8x32xf32> to vector<8x32xf32>
    %188 = arith.addf %185, %187 : vector<8x32xf32>
    %c0_78 = arith.constant 0 : index
    %c0_79 = arith.constant 0 : index
    %c0_80 = arith.constant 0 : index
    %189 = vector.load %arg19[%c0_78, %c0_79, %c0_80] : memref<1x8x32xf32, #tpu.memory_space<vmem>>, vector<1x8x32xf32>
    %190 = vector.shape_cast %189 : vector<1x8x32xf32> to vector<8x32xf32>
    %191 = vector.shape_cast %188 : vector<8x32xf32> to vector<1x8x32xf32>
    tpu.vector_store %arg19[%c0_78, %c0_79, %c0_80], %191 {strides = array<i32>} : memref<1x8x32xf32, #tpu.memory_space<vmem>>, vector<1x8x32xf32>,
    return
  }
  func.func @transform_0(%arg0: i32, %arg1: i32) -> (i32, i32, i32) {
    %c0_i32 = arith.constant 0 : i32
    %c0_i32_0 = arith.constant 0 : i32
    return %arg0, %arg1, %c0_i32 : i32, i32, i32
  }
  func.func @transform_1(%arg0: i32, %arg1: i32) -> (i32, i32, i32) {
    %c0_i32 = arith.constant 0 : i32
    %c0_i32_0 = arith.constant 0 : i32
    %c0_i32_1 = arith.constant 0 : i32
    return %arg0, %c0_i32, %c0_i32_0 : i32, i32, i32
  }
  func.func @transform_2(%arg0: i32, %arg1: i32) -> (i32, i32, i32) {
    %c0_i32 = arith.constant 0 : i32
    %c0_i32_0 = arith.constant 0 : i32
    return %arg0, %arg1, %c0_i32 : i32, i32, i32
  }
  func.func @transform_3(%arg0: i32, %arg1: i32) -> (i32, i32) {
    %c0_i32 = arith.constant 0 : i32
    %c0_i32_0 = arith.constant 0 : i32
    %c0_i32_1 = arith.constant 0 : i32
    return %c0_i32, %c0_i32_0 : i32, i32
  }
  func.func @transform_4(%arg0: i32, %arg1: i32) -> (i32, i32) {
    %c0_i32 = arith.constant 0 : i32
    %c0_i32_0 = arith.constant 0 : i32
    %c0_i32_1 = arith.constant 0 : i32
    return %c0_i32, %c0_i32_0 : i32, i32
  }
  func.func @transform_5(%arg0: i32, %arg1: i32) -> (i32, i32) {
    %c0_i32 = arith.constant 0 : i32
    %c0_i32_0 = arith.constant 0 : i32
    %c0_i32_1 = arith.constant 0 : i32
    return %c0_i32, %c0_i32_0 : i32, i32
  }
  func.func @transform_6(%arg0: i32, %arg1: i32) -> (i32, i32) {
    %c0_i32 = arith.constant 0 : i32
    %c0_i32_0 = arith.constant 0 : i32
    %c0_i32_1 = arith.constant 0 : i32
    return %c0_i32, %c0_i32_0 : i32, i32
  }
  func.func @transform_7(%arg0: i32, %arg1: i32) -> (i32, i32) {
    %c0_i32 = arith.constant 0 : i32
    %c0_i32_0 = arith.constant 0 : i32
    %c0_i32_1 = arith.constant 0 : i32
    return %c0_i32, %c0_i32_0 : i32, i32
  }
  func.func @transform_8(%arg0: i32, %arg1: i32) -> (i32, i32) {
    %c0_i32 = arith.constant 0 : i32
    %c0_i32_0 = arith.constant 0 : i32
    %c0_i32_1 = arith.constant 0 : i32
    return %c0_i32, %c0_i32_0 : i32, i32
  }
  func.func @transform_9(%arg0: i32, %arg1: i32) -> (i32, i32) {
    %c0_i32 = arith.constant 0 : i32
    %c0_i32_0 = arith.constant 0 : i32
    %c0_i32_1 = arith.constant 0 : i32
    return %c0_i32, %c0_i32_0 : i32, i32
  }
  func.func @transform_10(%arg0: i32, %arg1: i32) -> (i32, i32) {
    %c0_i32 = arith.constant 0 : i32
    %c0_i32_0 = arith.constant 0 : i32
    %c0_i32_1 = arith.constant 0 : i32
    return %c0_i32, %c0_i32_0 : i32, i32
  }
  func.func @transform_11(%arg0: i32, %arg1: i32) -> (i32, i32) {
    %c0_i32 = arith.constant 0 : i32
    %c0_i32_0 = arith.constant 0 : i32
    %c0_i32_1 = arith.constant 0 : i32
    return %c0_i32, %c0_i32_0 : i32, i32
  }
  func.func @transform_12(%arg0: i32, %arg1: i32) -> (i32, i32) {
    %c0_i32 = arith.constant 0 : i32
    %c0_i32_0 = arith.constant 0 : i32
    %c0_i32_1 = arith.constant 0 : i32
    return %c0_i32, %c0_i32_0 : i32, i32
  }
  func.func @transform_13(%arg0: i32, %arg1: i32) -> (i32, i32) {
    %c0_i32 = arith.constant 0 : i32
    %c0_i32_0 = arith.constant 0 : i32
    %c0_i32_1 = arith.constant 0 : i32
    return %c0_i32, %c0_i32_0 : i32, i32
  }
  func.func @transform_14(%arg0: i32, %arg1: i32) -> (i32, i32) {
    %c0_i32 = arith.constant 0 : i32
    %c0_i32_0 = arith.constant 0 : i32
    %c0_i32_1 = arith.constant 0 : i32
    return %c0_i32, %c0_i32_0 : i32, i32
  }
  func.func @transform_15(%arg0: i32, %arg1: i32) -> (i32, i32, i32) {
    %c0_i32 = arith.constant 0 : i32
    %c0_i32_0 = arith.constant 0 : i32
    %c0_i32_1 = arith.constant 0 : i32
    %c0_i32_2 = arith.constant 0 : i32
    return %c0_i32, %c0_i32_0, %c0_i32_1 : i32, i32, i32
  }
  func.func @transform_16(%arg0: i32, %arg1: i32) -> (i32, i32) {
    %c0_i32 = arith.constant 0 : i32
    %c0_i32_0 = arith.constant 0 : i32
    %c0_i32_1 = arith.constant 0 : i32
    return %c0_i32, %c0_i32_0 : i32, i32
  }
  func.func @transform_17(%arg0: i32, %arg1: i32) -> (i32, i32, i32) {
    %c0_i32 = arith.constant 0 : i32
    %c0_i32_0 = arith.constant 0 : i32
    return %arg0, %arg1, %c0_i32 : i32, i32, i32
  }
}

</mosaic_0001>

<bundles_post_ra>
// kernel: tpu_custom_call.1
= control target key start
LH: loop header
LB: loop body
LE: loop exit
PB: predicated region body
PF: predicated region fallthrough
CT: control target
= control target key end

     0   :  { %s3409_s0 = inlined_call_operand.hbm [shape: f32[2,8,32], index: 0, kind: input, shape index: {}]   ;;  %s3410_s1 = inlined_call_operand.hbm [shape: f32[2,8,32], index: 1, kind: input, shape index: {}]   ;;  %s3411_s2 = inlined_call_operand.hbm [shape: f32[2,8,32], index: 2, kind: input, shape index: {}]   ;;  %s3412_s3 = inlined_call_operand.vmem [shape: f32[1,32], index: 3, kind: input, shape index: {}]   ;;  %s3413_s4 = inlined_call_operand.hbm [shape: f32[1,32], index: 4, kind: input, shape index: {}]   ;;  %s3414_s5 = inlined_call_operand.hbm [shape: f32[1,32], index: 5, kind: input, shape index: {}]   ;;  %s3415_s6 = inlined_call_operand.hbm [shape: f32[1,32], index: 6, kind: input, shape index: {}]   ;;  %s3416_s7 = inlined_call_operand.hbm [shape: f32[1,32], index: 7, kind: input, shape index: {}]   ;;  %s3417_s8 = inlined_call_operand.hbm [shape: f32[1,32], index: 8, kind: input, shape index: {}]   ;;  %s3418_s9 = inlined_call_operand.vmem [shape: bf16[32,32], index: 9, kind: input, shape index: {}]   ;;  %s3419_s10 = inlined_call_operand.hbm [shape: f32[1,32], index: 10, kind: input, shape index: {}]   ;;  %s3420_s11 = inlined_call_operand.vmem [shape: bf16[32,32], index: 11, kind: input, shape index: {}]   ;;  %s3421_s12 = inlined_call_operand.hbm [shape: f32[1,32], index: 12, kind: input, shape index: {}]   ;;  %s3422_s13 = inlined_call_operand.vmem [shape: bf16[32,32], index: 13, kind: input, shape index: {}]   ;;  %s3423_s14 = inlined_call_operand.vmem [shape: f32[1,32], index: 14, kind: input, shape index: {}]   ;;  %s3424_s15 = inlined_call_operand.hbm [shape: bf16[4,8,32], index: 15, kind: input, shape index: {}]   ;;  %s3425_s16 = inlined_call_operand.vmem [shape: f32[1,32], index: 16, kind: input, shape index: {}]   ;;  %s3426_s17 = inlined_call_operand.hbm [shape: f32[2,8,32], index: 17, kind: output, shape index: {}]  }
   0x1   :  { %3454 = sst [smem:[#allocation36_spill]] %s3409_s0 }
   0x2   :  { %3455 = sst [smem:[#allocation37_spill]] %s3410_s1 }
   0x3   :  { %3456 = sst [smem:[#allocation38_spill]] %s3412_s3 }
   0x4   :  { %3457 = sst [smem:[#allocation39_spill]] %s3413_s4 }
   0x5   :  { %3458 = sst [smem:[#allocation40_spill]] %s3415_s6 }
   0x6   :  { %3459 = sst [smem:[#allocation41_spill]] %s3417_s8 }
   0x7   :  { %3460 = sst [smem:[#allocation42_spill]] %s3418_s9 }
   0x8   :  { %3461 = sst [smem:[#allocation43_spill]] %s3421_s12 }
   0x9   :  { %3462 = sst [smem:[#allocation44_spill]] %s3422_s13 }
   0xa   :  { %3463 = sst [smem:[#allocation45_spill]] %s3423_s14 }
   0xb   :  { %3464 = sst [smem:[#allocation46_spill]] %s3425_s16 }
   0xc   :  { %3465 = sst [smem:[#allocation47_spill]] %s3426_s17 }
   0xd   :  { %22 = vsyncpa [#allocation3], 0 }
   0xe   :  { %24 = vsyncpa [#allocation3 + $0x1], 0 }
   0xf   :  { %25 = vsyncpa [#allocation6], 0 }
  0x10   :  { %27 = vsyncpa [#allocation6 + $0x1], 0 }
  0x11   :  { %28 = vsyncpa [#allocation9], 0 }
  0x12   :  { %29 = vsyncpa [#allocation12], 0 }
  0x13   :  { %30 = vsyncpa [#allocation15], 0 }
  0x14   :  { %31 = vsyncpa [#allocation18], 0 }
  0x15   :  { %32 = vsyncpa [#allocation4], 0 }
  0x16   :  { %34 = vsyncpa [#allocation4 + $0x1], 0  ;;  %s2807_s24 = smov 0   ;;  %s2809_s25 = smov 0  }
  0x17   :  { %s2811_s26 = smov 0   ;;  %s2813_s27 = smov 0  }
  0x18   :  { %s2815_s28 = smov 0   ;;  %s2817_s29 = smov 0  }
  0x19 LB: > { %3466 = sst [smem:[#allocation28_spill]] %s2675_s24  ;;  %s2838_s0 = sadd.s32 4294967295, %s2695_s29   ;;  %s2695_s29 = sphi %s2817_s29, %s40_s29   ;;  %s2691_s28 = sphi %s2815_s28, %s3522_s28   ;;  %s2687_s27 = sphi %s2813_s27, %s3526_s27   ;;  %s2683_s26 = sphi %s2811_s26, %s3525_s26   ;;  %s2679_s25 = sphi %s2809_s25, %s3524_s25   ;;  %s2675_s24 = sphi %s2807_s24, %s3523_s24  }
  0x1a   : > { %3467 = sst [smem:[#allocation29_spill]] %s2687_s27  ;;  %p1901_p0 = scmp.ge.s32.totalorder %s2695_s29, 1 }
  0x1b   : > { %3468 = sst [smem:[#allocation30_spill]] %s2691_s28  ;;  %p3431_p1 = scmp.eq.s32.totalorder %s2838_s0, 0 }
  0x1c   : > { %3469 = sst [smem:[#allocation31_spill]] %s2695_s29  ;;  %p461_p2 = scmp.lt.s32.totalorder %s2695_s29, 3 }
  0x1d   : > { %s2697_s18 = smov [#allocation8]   ;;  %s2698_s1 = smov [#allocation11]  }
  0x1e   : > { %p2843_p3 = pnand %p1901_p0, %p461_p2  ;;  %s477_s19 = sshll.u32 %s2697_s18, 4  ;;  %s478_s19 = int_to_ptr.vmem [resolvable:$true] %s477_s19 }
  0x1f   : > { %s499_s20 = sshll.u32 %s2698_s1, 4  ;;  %s2699_s22 = smov [#allocation14]   ;;  %s2856_s20 = int_to_ptr.vmem [resolvable:$true] %s499_s20 }
  0x20   : > { %s3470_s30 = scalar_select %p2843_p3, 1, 0 }
  0x21   : > { %p2132_p5 = pneg %p2843_p3  ;;  %s521_s23 = sshll.u32 %s2699_s22, 4  ;;  %s2858_s23 = int_to_ptr.vmem [resolvable:$true] %s521_s23 }
  0x22   : > { %s3472_s4 = sld [smem:[#allocation39_spill]] }
  0x23   : > { %p2852_p6 = pnand %p2132_p5, %p3431_p1 }
  0x25   : > { %s3471_s21 = scalar_select %p2852_p6, 1, 0 }
  0x26   : > { %p2868_p8 = pneg %p2852_p6 }
  0x28   : > { %s2279_s16 = scalar_lea.hbm %s3472_s4, 16 }
  0x29   : > { %p2280_p7 = scmp.ne.s32.totalorder %s3472_s4, %s2279_s16  ;;  %p2286_p11 = scmp.lt.u32.totalorder %s2279_s16, %s3472_s4 }
  0x2a   : > { %s3473_s1 = scalar_select %p2868_p8, 1, 0 }
  0x2b   : > { %p2282_p9 = pnand %p2868_p8, %p2280_p7 }
  0x2d   : > { %p2283_p10 = pneg %p2282_p9 }
  0x2f   : > { %p2288_p12 = pnand %p2286_p11, %p2283_p10 }
  0x31   : > { %2291 = shalt.err (!%p2288_p12)
}
  0x32   : > { %s2292_s17 = scalar_lea.vmem %s478_s19, 16  ;;  %s2299_s14 = scalar_lea.vmem %s478_s19, 32 }
  0x33   : > { %p2293_p13 = scmp.ne.s32.totalorder %s478_s19, %s2292_s17  ;;  %p2300_p5 = scmp.lt.s32.totalorder %s478_s19, %s478_s19 }
  0x34   : > { %p2301_p4 = scmp.lt.s32.totalorder %s2299_s14, %s2292_s17 }
  0x35   : > { %p2295_p0 = pnand %p2293_p13, %p2868_p8 }
  0x36   : > { %p2302_p1 = por %p2301_p4, %p2300_p5 }
  0x37   : > { %p2296_p2 = pneg %p2295_p0 }
  0x39   : > { %p2303_p3 = pnand %p2302_p1, %p2296_p2 }
  0x3b   : > { %2306 = shalt.err (!%p2303_p3)
}
  0x3c   : > { %2135 = dma.hbm_to_vmem [thread:$0]  (!%p2852_p6), %s3472_s4, 16, %s478_s19, [#allocation9]  }
  0x3d   : > { %s3474_s6 = sld [smem:[#allocation40_spill]] }
  0x43   : > { %s2307_s22 = scalar_lea.hbm %s3474_s6, 16 }
  0x44   : > { %p2308_p7 = scmp.ne.s32.totalorder %s3474_s6, %s2307_s22  ;;  %p2314_p1 = scmp.lt.u32.totalorder %s2307_s22, %s3474_s6 }
  0x46   : > { %p2310_p9 = pnand %p2308_p7, %p2868_p8 }
  0x48   : > { %p2311_p4 = pneg %p2310_p9 }
  0x4a   : > { %p2316_p3 = pnand %p2314_p1, %p2311_p4 }
  0x4c   : > { %2319 = shalt.err (!%p2316_p3)
}
  0x4d   : > { %s2320_s19 = scalar_lea.vmem %s2856_s20, 16  ;;  %s2327_s3 = scalar_lea.vmem %s2856_s20, 32 }
  0x4e   : > { %p2321_p10 = scmp.ne.s32.totalorder %s2856_s20, %s2320_s19  ;;  %p2328_p13 = scmp.lt.s32.totalorder %s2856_s20, %s2856_s20 }
  0x4f   : > { %p2329_p0 = scmp.lt.s32.totalorder %s2327_s3, %s2320_s19 }
  0x50   : > { %p2323_p11 = pnand %p2321_p10, %p2868_p8 }
  0x51   : > { %p2330_p2 = por %p2329_p0, %p2328_p13 }
  0x52   : > { %p2324_p12 = pneg %p2323_p11 }
  0x54   : > { %p2331_p5 = pnand %p2330_p2, %p2324_p12 }
  0x56   : > { %2334 = shalt.err (!%p2331_p5)
}
  0x57   : > { %2141 = dma.hbm_to_vmem [thread:$0]  (!%p2852_p6), %s3474_s6, 16, %s2856_s20, [#allocation12]  }
  0x58   : > { %s3475_s8 = sld [smem:[#allocation41_spill]] }
  0x5e   : > { %s2335_s16 = scalar_lea.hbm %s3475_s8, 16 }
  0x5f   : > { %p2336_p7 = scmp.ne.s32.totalorder %s3475_s8, %s2335_s16  ;;  %p2342_p1 = scmp.lt.u32.totalorder %s2335_s16, %s3475_s8 }
  0x61   : > { %p2338_p9 = pnand %p2336_p7, %p2868_p8 }
  0x63   : > { %p2339_p4 = pneg %p2338_p9 }
  0x65   : > { %p2344_p3 = pnand %p2342_p1, %p2339_p4 }
  0x67   : > { %2347 = shalt.err (!%p2344_p3)
}
  0x68   : > { %s2348_s20 = scalar_lea.vmem %s2858_s23, 16  ;;  %s2355_s3 = scalar_lea.vmem %s2858_s23, 32 }
  0x69   : > { %p2349_p10 = scmp.ne.s32.totalorder %s2858_s23, %s2348_s20  ;;  %p2356_p13 = scmp.lt.s32.totalorder %s2858_s23, %s2858_s23 }
  0x6a   : > { %p2357_p0 = scmp.lt.s32.totalorder %s2355_s3, %s2348_s20 }
  0x6b   : > { %p2351_p11 = pnand %p2349_p10, %p2868_p8 }
  0x6c   : > { %p2358_p2 = por %p2357_p0, %p2356_p13 }
  0x6d   : > { %p2352_p12 = pneg %p2351_p11 }
  0x6f   : > { %p2359_p5 = pnand %p2358_p2, %p2352_p12 }
  0x71   : > { %2362 = shalt.err (!%p2359_p5)
}
  0x72   : > { %2147 = dma.hbm_to_vmem [thread:$0]  (!%p2852_p6), %s3475_s8, 16, %s2858_s23, [#allocation15]  }
  0x73   : > { %s2700_s18 = smov [#allocation17]   ;;  %s3476_s12 = sld [smem:[#allocation43_spill]] }
  0x74   : > { %s549_s13 = sshll.u32 %s2700_s18, 4  ;;  %s550_s13 = int_to_ptr.vmem [resolvable:$true] %s549_s13 }
  0x79   : > { %s2363_s17 = scalar_lea.hbm %s3476_s12, 16 }
  0x7a   : > { %p2364_p7 = scmp.ne.s32.totalorder %s3476_s12, %s2363_s17  ;;  %p2370_p1 = scmp.lt.u32.totalorder %s2363_s17, %s3476_s12 }
  0x7c   : > { %p2366_p9 = pnand %p2364_p7, %p2868_p8 }
  0x7e   : > { %p2367_p4 = pneg %p2366_p9 }
  0x80   : > { %p2372_p3 = pnand %p2370_p1, %p2367_p4 }
  0x82   : > { %2375 = shalt.err (!%p2372_p3)
}
  0x83   : > { %s2376_s23 = scalar_lea.vmem %s550_s13, 16  ;;  %s2383_s9 = scalar_lea.vmem %s550_s13, 32 }
  0x84   : > { %p2377_p10 = scmp.ne.s32.totalorder %s550_s13, %s2376_s23  ;;  %p2384_p13 = scmp.lt.s32.totalorder %s550_s13, %s550_s13 }
  0x85   : > { %p2385_p0 = scmp.lt.s32.totalorder %s2383_s9, %s2376_s23 }
  0x86   : > { %p2379_p11 = pnand %p2377_p10, %p2868_p8 }
  0x87   : > { %p2386_p2 = por %p2385_p0, %p2384_p13 }
  0x88   : > { %p2380_p12 = pneg %p2379_p11 }
  0x8a   : > { %p2387_p5 = pnand %p2386_p2, %p2380_p12 }
  0x8c   : > { %2390 = shalt.err (!%p2387_p5)
}
  0x8d   : > { %2153 = dma.hbm_to_vmem [thread:$0]  (!%p2852_p6), %s3476_s12, 16, %s550_s13, [#allocation18]  }
  0x8e   : > { %s1900_s16 = sadd.s32 4294967294, %s2695_s29   ;;  %s52_s22 = sadd.s32 1, %s2691_s28 }
  0x8f   : > { %p54_p7 = scmp.ge.s32.totalorder %s52_s22, 2  ;;  %s61_s17 = sadd.s32 1, %s2683_s26 }
  0x90   : > { %p68_p9 = scmp.ne.s32.totalorder %s2683_s26, %s2679_s25  ;;  %p69_p4 = scmp.eq.s32.totalorder %s2695_s29, 0 }
  0x91   : > { %s3528_s22 = smov (%p54_p7, %s52_s22), 0  ;;  %p74_p3 = scmp.ne.s32.totalorder %s2679_s25, %s2675_s24 }
  0x92   : > { %3477 = sst [smem:[#allocation32_spill]] %s3528_s22  ;;  %p2958_p1 = por %p69_p4, %p68_p9 }
  0x93   : > { %s56_s13 = ssub.s32 %s2691_s28, %s3528_s22  ;;  %p448_p10 = scmp.eq.s32.totalorder %s2838_s0, 1 }
  0x94   : > { %p59_p11 = scmp.eq.s32.totalorder %s56_s13, 0  ;;  %p3479_p12 = scmp.eq.s32.totalorder %s2838_s0, 0 }
  0x95   : > { %p2973_p0 = por %p448_p10, %p68_p9  ;;  %p454_p2 = scmp.eq.s32.totalorder %s1900_s16, 1 }
  0x96   : > { %p2969_p13 = por %p3479_p12, %p74_p3  ;;  %p2179_p7 = scmp.lt.s32.totalorder %s2695_s29, 2 }
  0x97   : > { %s3481_s20 = scalar_select %p2973_p0, 1, 0 }
  0x98   : > { %s3480_s19 = scalar_select %p2969_p13, 1, 0 }
  0x99   : > { %3482 = sst [smem:[#allocation33_spill]] %s3481_s20  ;;  %p2980_p5 = por %p454_p2, %p74_p3 }
  0x9a   : > { %s2978_s3 = scalar_select %p59_p11, %s2683_s26, %s61_s17  }
  0x9b   : > { %s3484_s23 = scalar_select %p2980_p5, 1, 0 }
  0x9c   : > { %3483 = sst [smem:[#allocation34_spill]] %s2978_s3  ;;  %s3434_s9 = sand.u32 1, %s2683_s26  }
  0x9d   : > { %3485 = sst [smem:[#allocation35_spill]] %s3484_s23  ;;  %s2987_s27 = sshll.u32 %s2691_s28, 7 }
  0x9e   : > { %s2991_s18 = sshll.u32 %s3434_s9, 3  ;;  %p2995_p9 = pnand %p2179_p7, %p2958_p1 }
  0x9f   : > { %s601_s16 = sand.u32 1, %s2695_s29   ;;  %s3487_s6 = sld [smem:[#allocation37_spill]] }
  0xa0   : > { %s3486_s13 = scalar_select %p2995_p9, 1, 0 }
  0xa1   : > { %s605_s12 = scalar_lea.vmem [#allocation5], %s2991_s18  ;;  %s3009_s14 = scalar_lea.sflag [#allocation6], %s601_s16 }
  0xa2   : > { %s612_s9 = sshll.u32 %s605_s12, 4  ;;  %p3015_p1 = pneg %p2995_p9  ;;  %s3007_s9 = int_to_ptr.vmem [resolvable:$true] %s612_s9 }
  0xa4   : > { %s3488_s28 = scalar_select %p3015_p1, 1, 0 }
  0xa5   : > { %s3004_s8 = scalar_lea.hbm %s3487_s6, %s2987_s27  ;;  %s2396_s3 = scalar_lea.hbm %s3487_s6, 256 }
  0xa6   : > { %s2391_s22 = scalar_lea.hbm %s3004_s8, 128  ;;  %p2397_p11 = scmp.lt.u32.totalorder %s3004_s8, %s3487_s6 }
  0xa7   : > { %p2392_p4 = scmp.ne.s32.totalorder %s3004_s8, %s2391_s22  ;;  %p2398_p12 = scmp.lt.u32.totalorder %s2396_s3, %s2391_s22 }
  0xa8   : > { %p2400_p7 = scmp.lt.u32.totalorder %s2391_s22, %s3004_s8 }
  0xa9   : > { %p2394_p3 = pnand %p3015_p1, %p2392_p4  ;;  %p2399_p2 = por %p2398_p12, %p2397_p11 }
  0xab   : > { %p2395_p10 = pneg %p2394_p3  ;;  %p2401_p5 = por %p2400_p7, %p2399_p2 }
  0xad   : > { %p2402_p0 = pnand %p2401_p5, %p2395_p10 }
  0xaf   : > { %2405 = shalt.err (!%p2402_p0)
}
  0xb0   : > { %s2406_s16 = scalar_lea.vmem %s3007_s9, 128  ;;  %s2701_s4 = smov [#allocation5]  }
  0xb1   : > { %p2407_p4 = scmp.ne.s32.totalorder %s3007_s9, %s2406_s16  ;;  %s2411_s17 = sshll.u32 %s2701_s4, 4  ;;  %s2412_s17 = int_to_ptr.vmem [resolvable:$false] %s2411_s17 }
  0xb2   : > { %s2413_s29 = scalar_lea.vmem %s2412_s17, 256  ;;  %p2414_p6 = scmp.lt.s32.totalorder %s3007_s9, %s2412_s17 }
  0xb3   : > { %p2409_p3 = pnand %p2407_p4, %p3015_p1  ;;  %p2415_p8 = scmp.lt.s32.totalorder %s2413_s29, %s2406_s16 }
  0xb5   : > { %p2410_p13 = pneg %p2409_p3  ;;  %p2416_p11 = por %p2415_p8, %p2414_p6 }
  0xb7   : > { %p2417_p12 = pnand %p2416_p11, %p2410_p13 }
  0xb9   : > { %2420 = shalt.err (!%p2417_p12)
}
  0xba   : > { %2163 = dma.hbm_to_vmem [thread:$0]  (!%p2995_p9), %s3004_s8, 128, %s3007_s9, %s3009_s14  }
  0xbb   : > { %s2702_s22 = smov [#allocation10]   ;;  %s2703_s12 = smov [#allocation13]  }
  0xbc   : > { %s488_s3 = sshll.u32 %s2702_s22, 4  ;;  %s510_s6 = sshll.u32 %s2703_s12, 4  ;;  %s489_s3 = int_to_ptr.vmem [resolvable:$true] %s488_s3  ;;  %s511_s6 = int_to_ptr.vmem [resolvable:$true] %s510_s6 }
  0xbd   : > { %s2421_s17 = scalar_lea.hbm %s3414_s5, 16  ;;  %p3489_p8 = scmp.ne.s32.totalorder %s3473_s1, 0 }
  0xbe   : > { %p2422_p6 = scmp.ne.s32.totalorder %s3414_s5, %s2421_s17  ;;  %p2428_p5 = scmp.lt.u32.totalorder %s2421_s17, %s3414_s5 }
  0xc0   : > { %p2424_p13 = pnand %p2422_p6, %p3489_p8 }
  0xc2   : > { %p2425_p0 = pneg %p2424_p13 }
  0xc4   : > { %p2430_p10 = pnand %p2428_p5, %p2425_p0 }
  0xc6   : > { %2433 = shalt.err (!%p2430_p10)
}
  0xc7   : > { %s2434_s8 = scalar_lea.vmem %s489_s3, 16  ;;  %s2441_s23 = scalar_lea.vmem %s489_s3, 32 }
  0xc8   : > { %p2435_p2 = scmp.ne.s32.totalorder %s489_s3, %s2434_s8  ;;  %p2442_p3 = scmp.lt.s32.totalorder %s489_s3, %s489_s3 }
  0xc9   : > { %p2443_p11 = scmp.lt.s32.totalorder %s2441_s23, %s2434_s8 }
  0xca   : > { %p2437_p7 = pnand %p2435_p2, %p3489_p8 }
  0xcb   : > { %p2444_p12 = por %p2443_p11, %p2442_p3 }
  0xcc   : > { %p2438_p4 = pneg %p2437_p7 }
  0xce   : > { %p2445_p9 = pnand %p2444_p12, %p2438_p4 }
  0xd0   : > { %2448 = shalt.err (!%p2445_p9)
}
  0xd1   : > { %p3490_p6 = scmp.ne.s32.totalorder %s3471_s21, 0  ;;  %s2449_s12 = scalar_lea.hbm %s3416_s7, 16 }
  0xd2   : > { %p2450_p13 = scmp.ne.s32.totalorder %s3416_s7, %s2449_s12  ;;  %p2456_p9 = scmp.lt.u32.totalorder %s2449_s12, %s3416_s7 }
  0xd3   : > { %2138 = dma.hbm_to_vmem [thread:$0]  (!%p3490_p6), %s3414_s5, 16, %s489_s3, [#allocation9]  }
  0xd4   : > { %p2452_p0 = pnand %p2450_p13, %p3489_p8 }
  0xd6   : > { %p2453_p5 = pneg %p2452_p0 }
  0xd8   : > { %p2458_p10 = pnand %p2456_p9, %p2453_p5 }
  0xda   : > { %2461 = shalt.err (!%p2458_p10)
}
  0xdb   : > { %s2462_s8 = scalar_lea.vmem %s511_s6, 16  ;;  %s2469_s3 = scalar_lea.vmem %s511_s6, 32 }
  0xdc   : > { %p2463_p2 = scmp.ne.s32.totalorder %s511_s6, %s2462_s8  ;;  %p2470_p3 = scmp.lt.s32.totalorder %s511_s6, %s511_s6 }
  0xdd   : > { %p2471_p11 = scmp.lt.s32.totalorder %s2469_s3, %s2462_s8 }
  0xde   : > { %p2465_p7 = pnand %p2463_p2, %p3489_p8 }
  0xdf   : > { %p2472_p12 = por %p2471_p11, %p2470_p3 }
  0xe0   : > { %p2466_p4 = pneg %p2465_p7 }
  0xe2   : > { %p2473_p1 = pnand %p2472_p12, %p2466_p4 }
  0xe4   : > { %2476 = shalt.err (!%p2473_p1)
}
  0xe5   : > { %2144 = dma.hbm_to_vmem [thread:$0]  (!%p3490_p6), %s3416_s7, 16, %s511_s6, [#allocation12]  }
  0xe6   : > { %s2704_s22 = smov [#allocation16]   ;;  %s2705_s20 = smov [#allocation19]  }
  0xe7   : > { %s535_s24 = sshll.u32 %s2704_s22, 4  ;;  %s565_s12 = sshll.u32 %s2705_s20, 4  ;;  %s536_s24 = int_to_ptr.vmem [resolvable:$true] %s535_s24  ;;  %s566_s12 = int_to_ptr.vmem [resolvable:$true] %s565_s12 }
  0xe8   : > { %s2477_s16 = scalar_lea.hbm %s3419_s10, 16 }
  0xe9   : > { %p2478_p1 = scmp.ne.s32.totalorder %s3419_s10, %s2477_s16  ;;  %p2484_p5 = scmp.lt.u32.totalorder %s2477_s16, %s3419_s10 }
  0xeb   : > { %p2480_p13 = pnand %p2478_p1, %p3489_p8 }
  0xed   : > { %p2481_p0 = pneg %p2480_p13 }
  0xef   : > { %p2486_p9 = pnand %p2484_p5, %p2481_p0 }
  0xf1   : > { %2489 = shalt.err (!%p2486_p9)
}
  0xf2   : > { %s2490_s6 = scalar_lea.vmem %s536_s24, 16  ;;  %s2497_s9 = scalar_lea.vmem %s536_s24, 32 }
  0xf3   : > { %p2491_p10 = scmp.ne.s32.totalorder %s536_s24, %s2490_s6  ;;  %p2498_p4 = scmp.lt.s32.totalorder %s536_s24, %s536_s24 }
  0xf4   : > { %p2499_p3 = scmp.lt.s32.totalorder %s2497_s9, %s2490_s6 }
  0xf5   : > { %p2493_p2 = pnand %p2491_p10, %p3489_p8 }
  0xf6   : > { %p2500_p11 = por %p2499_p3, %p2498_p4 }
  0xf7   : > { %p2494_p7 = pneg %p2493_p2 }
  0xf9   : > { %p2501_p12 = pnand %p2500_p11, %p2494_p7 }
  0xfb   : > { %2504 = shalt.err (!%p2501_p12)
}
  0xfc   : > { %2150 = dma.hbm_to_vmem [thread:$0]  (!%p3490_p6), %s3419_s10, 16, %s536_s24, [#allocation15]  }
  0xfd   : > { %s2505_s16 = scalar_lea.hbm %s3424_s15, 256 }
  0xfe   : > { %p2506_p1 = scmp.ne.s32.totalorder %s3424_s15, %s2505_s16  ;;  %p2512_p5 = scmp.lt.u32.totalorder %s2505_s16, %s3424_s15 }
 0x100   : > { %p2508_p13 = pnand %p2506_p1, %p3489_p8 }
 0x102   : > { %p2509_p0 = pneg %p2508_p13 }
 0x104   : > { %p2514_p9 = pnand %p2512_p5, %p2509_p0 }
 0x106   : > { %2517 = shalt.err (!%p2514_p9)
}
 0x107   : > { %s2518_s6 = scalar_lea.vmem %s566_s12, 256  ;;  %p2526_p4 = scmp.lt.s32.totalorder %s566_s12, %s566_s12 }
 0x108   : > { %p2519_p10 = scmp.ne.s32.totalorder %s566_s12, %s2518_s6  ;;  %p2527_p3 = scmp.lt.s32.totalorder %s2518_s6, %s2518_s6 }
 0x10a   : > { %p2521_p2 = pnand %p2519_p10, %p3489_p8  ;;  %p2528_p11 = por %p2527_p3, %p2526_p4 }
 0x10c   : > { %p2522_p7 = pneg %p2521_p2 }
 0x10e   : > { %p2529_p12 = pnand %p2528_p11, %p2522_p7 }
 0x110   : > { %2532 = shalt.err (!%p2529_p12)
}
 0x111   : > { %s2706_s24 = smov 64   ;;  %s2707_s9 = smov 4  }
 0x112   : > { %2156 = dma.hbm_to_vmem [thread:$0]  (!%p3490_p6), %s3424_s15, 256, %s566_s12, [#allocation18], %s2706_s24, %s2706_s24, %s2707_s9  }
 0x113   : > { %s3491_s17 = sld [smem:[#allocation36_spill]]  ;;  %s586_s29 = scalar_lea.vmem [#allocation2], %s2991_s18 }
 0x114   : > { %s594_s8 = sshll.u32 %s586_s29, 4  ;;  %s3124_s21 = scalar_lea.hbm %s3411_s2, %s2987_s27  ;;  %s3118_s8 = int_to_ptr.vmem [resolvable:$true] %s594_s8 }
 0x115   : > { %s3492_s6 = sand.u32 1, %s2683_s26   ;;  %p3493_p6 = scmp.ne.s32.totalorder %s3488_s28, 0 }
 0x116   : > { %s583_s12 = scalar_lea.sflag [#allocation3], %s3492_s6 }
 0x119   : > { %s3115_s16 = scalar_lea.hbm %s3491_s17, %s2987_s27  ;;  %s2538_s20 = scalar_lea.hbm %s3491_s17, 256 }
 0x11a   : > { %s2533_s24 = scalar_lea.hbm %s3115_s16, 128  ;;  %p2539_p0 = scmp.lt.u32.totalorder %s3115_s16, %s3491_s17 }
 0x11b   : > { %p2534_p8 = scmp.ne.s32.totalorder %s3115_s16, %s2533_s24  ;;  %p2540_p5 = scmp.lt.u32.totalorder %s2538_s20, %s2533_s24 }
 0x11c   : > { %p2542_p10 = scmp.lt.u32.totalorder %s2533_s24, %s3115_s16 }
 0x11d   : > { %p2536_p1 = pnand %p2534_p8, %p3493_p6  ;;  %p2541_p9 = por %p2540_p5, %p2539_p0 }
 0x11f   : > { %p2537_p13 = pneg %p2536_p1  ;;  %p2543_p2 = por %p2542_p10, %p2541_p9 }
 0x121   : > { %p2544_p7 = pnand %p2543_p2, %p2537_p13 }
 0x123   : > { %2547 = shalt.err (!%p2544_p7)
}
 0x124   : > { %s2548_s27 = scalar_lea.vmem %s3118_s8, 128  ;;  %s2708_s29 = smov [#allocation2]  }
 0x125   : > { %p2549_p4 = scmp.ne.s32.totalorder %s3118_s8, %s2548_s27  ;;  %s2553_s3 = sshll.u32 %s2708_s29, 4  ;;  %s2554_s3 = int_to_ptr.vmem [resolvable:$false] %s2553_s3 }
 0x126   : > { %s2555_s23 = scalar_lea.vmem %s2554_s3, 256  ;;  %p2556_p12 = scmp.lt.s32.totalorder %s3118_s8, %s2554_s3 }
 0x127   : > { %p2551_p3 = pnand %p2549_p4, %p3493_p6  ;;  %p2557_p8 = scmp.lt.s32.totalorder %s2555_s23, %s2548_s27 }
 0x129   : > { %p2552_p11 = pneg %p2551_p3  ;;  %p2558_p1 = por %p2557_p8, %p2556_p12 }
 0x12b   : > { %p2559_p0 = pnand %p2558_p1, %p2552_p11 }
 0x12d   : > { %2562 = shalt.err (!%p2559_p0)
}
 0x12e   : > { %p3494_p13 = scmp.ne.s32.totalorder %s3486_s13, 0  ;;  %s623_s6 = scalar_lea.vmem [#allocation7], %s2991_s18 }
 0x12f   : > { %s631_s24 = sshll.u32 %s623_s6, 4  ;;  %s2563_s9 = scalar_lea.hbm %s3124_s21, 128  ;;  %s632_s24 = int_to_ptr.vmem [resolvable:$true] %s631_s24 }
 0x130   : > { %2160 = dma.hbm_to_vmem [thread:$0]  (!%p3494_p13), %s3115_s16, 128, %s3118_s8, %s583_s12  }
 0x131   : > { %p2564_p5 = scmp.ne.s32.totalorder %s3124_s21, %s2563_s9  ;;  %s2568_s1 = scalar_lea.hbm %s3411_s2, 256 }
 0x132   : > { %p2569_p2 = scmp.lt.u32.totalorder %s3124_s21, %s3411_s2  ;;  %p2570_p7 = scmp.lt.u32.totalorder %s2568_s1, %s2563_s9 }
 0x133   : > { %p2566_p9 = pnand %p2564_p5, %p3493_p6  ;;  %p2572_p3 = scmp.lt.u32.totalorder %s2563_s9, %s3124_s21 }
 0x134   : > { %p2571_p4 = por %p2570_p7, %p2569_p2 }
 0x135   : > { %p2567_p10 = pneg %p2566_p9 }
 0x136   : > { %p2573_p11 = por %p2572_p3, %p2571_p4 }
 0x138   : > { %p2574_p12 = pnand %p2573_p11, %p2567_p10 }
 0x13a   : > { %2577 = shalt.err (!%p2574_p12)
}
 0x13b   : > { %s2578_s18 = scalar_lea.vmem %s632_s24, 128  ;;  %s2709_s16 = smov [#allocation7]  }
 0x13c   : > { %p2579_p8 = scmp.ne.s32.totalorder %s632_s24, %s2578_s18  ;;  %s2583_s8 = sshll.u32 %s2709_s16, 4  ;;  %s2584_s8 = int_to_ptr.vmem [resolvable:$false] %s2583_s8 }
 0x13d   : > { %s2585_s12 = scalar_lea.vmem %s2584_s8, 256  ;;  %p2586_p5 = scmp.lt.s32.totalorder %s632_s24, %s2584_s8 }
 0x13e   : > { %p2581_p1 = pnand %p2579_p8, %p3493_p6  ;;  %p2587_p9 = scmp.lt.s32.totalorder %s2585_s12, %s2578_s18 }
 0x140   : > { %p2582_p0 = pneg %p2581_p1  ;;  %p2588_p13 = por %p2587_p9, %p2586_p5 }
 0x142   : > { %p2589_p2 = pnand %p2588_p13, %p2582_p0 }
 0x144   : > { %2592 = shalt.err (!%p2589_p2)
}
 0x145   : > { %p3495_p7 = scmp.ne.s32.totalorder %s3486_s13, 0  ;;  %p3496_p10 = scmp.ne.s32.totalorder %s3470_s30, 0 }
 0x146   : > { %s3171_s28 = sand.u32 (!%p3496_p10), 1, %s2679_s25   ;;  %p3497_p6 = scmp.ne.s32.totalorder (!%p3496_p10), %s3480_s19, 0 }
 0x147   : > { %2166 = dma.hbm_to_vmem [thread:$0]  (!%p3495_p7), %s3124_s21, 128, %s632_s24, %s3009_s14  }
 0x148   : > { %640 = sbr.rel (%p3496_p10) target bundleno = 2815 (0xaff), region = 88  ;;  %s3174_s29 = sshll.u32 (!%p3496_p10), %s3171_s28, 3 }
 0x149   : > { %s643_s3 = scalar_lea.sflag (!%p3496_p10), [#allocation3], %s3171_s28  ;;  %s646_s23 = scalar_lea.vmem (!%p3496_p10), [#allocation2], %s3174_s29 }
 0x14f   : > { %2646 = dma.done.wait (%p3497_p6), %s643_s3, 128  }
 0x150   : > { %2648 = vsyncadd (%p3497_p6), %s643_s3, 4294967168  ;;  %s651_s30 = sand.u32 1, %s2838_s0   ;;  %s655_s14 = scalar_lea.vmem [#allocation5], %s3174_s29 }
 0x151   : > { %s652_s13 = scalar_lea.sflag [#allocation6], %s651_s30 }
 0x152   : > { %2650 = dma.done.wait (%p3497_p6), %s652_s13, 256  }
 0x153   : > { %2652 = vsyncadd (%p3497_p6), %s652_s13, 4294967040  ;;  %s664_s21 = scalar_lea.vmem [#allocation7], %s3174_s29  ;;  %p3498_p13 = scmp.eq.s32.totalorder %s2838_s0, 0 }
 0x155   : > { %2654 = dma.done.wait (%p3498_p13), [#allocation9], 32   ;;  %p3499_p4 = pmov %p3498_p13 }
 0x157   : > { %2656 = vsyncadd (%p3499_p4), [#allocation9], 4294967264  ;;  %p3500_p3 = pmov %p3499_p4 }
 0x159   : > { %2658 = dma.done.wait (%p3500_p3), [#allocation12], 32   ;;  %p3501_p11 = pmov %p3500_p3 }
 0x15a   : > { %p3502_p12 = pmov %p3500_p3 }
 0x15b   : > { %2660 = vsyncadd (%p3501_p11), [#allocation12], 4294967264 }
 0x15c   : > { %2662 = dma.done.wait (%p3502_p12), [#allocation15], 32   ;;  %p3503_p8 = pmov %p3500_p3 }
 0x15d   : > { %p3504_p1 = pmov %p3500_p3 }
 0x15e   : > { %2664 = vsyncadd (%p3503_p8), [#allocation15], 4294967264 }
 0x15f   : > { %2666 = dma.done.wait (%p3504_p1), [#allocation18], 272   ;;  %p3505_p0 = pmov %p3504_p1 }
 0x160   : > { %vm762_vm0 = vcmask 261120   ;;  %v759_v0 = vld [vmem:[%s655_s14] sm:$0xff]  ;;  %v758_v1 = vld [vmem:[%s646_s23] sm:$0xff]  ;;  %s3506_s9 = sld [smem:[#allocation42_spill]]  ;;  %v2710_v16 = vmov 0.0   ;;  %vm2711_vm1 = vmmov 0  }
 0x161   : > { %2668 = vsyncadd (%p3505_p0), [#allocation18], 4294967024  ;;  %v793_v2 = vsel %vm762_vm0, %v759_v0, 0.0  ;;  %v763_v3 = vsel %vm762_vm0, %v758_v1, 0.0  ;;  %v2253_v14 = vld [vmem:[%s3420_s11] sm:$0xff]   ;;  %2004 = vmatprep.subr.bf16.mxu1 %v2710_v16  ;;  %1996 = vmatprep.subr.bf16.mxu0 %v2710_v16  ;;  %v2255_v17 = vld [vmem:[%s3420_s11 + $0x8] sm:$0xff]  }
 0x162   : > { %794 = vadd.xlane.f32.xlu0 %v793_v2  ;;  %2005 = vmatpush3.bf16.msra.mxu1 %v2253_v14  ;;  %v1932_v25 = vld [vmem:[#allocation10] ss:$0 sm:$0xff]  ;;  %v1933_v28 = vld [vmem:[#allocation11] ss:$0 sm:$0xff]  ;;  %s3507_s16 = sld [smem:[#allocation38_spill]]  ;;  %s3508_s3 = sld [smem:[#allocation44_spill]] }
 0x163   : > { %2006 = vmatprep.subr.bf16.mxu1 %v2710_v16  ;;  %2008 = vmatprep.mubr.msk.bf16.mxu1 %vm2711_vm1, %v2710_v16  ;;  %v1931_v34 = vld [vmem:[#allocation8] ss:$0 sm:$0xff]  ;;  %v1938_v41 = vld [vmem:[#allocation17] ss:$0 sm:$0xff]  ;;  %v1934_v46 = vld [vmem:[#allocation16] ss:$0 sm:$0xff] }
 0x164   : > { %2000 = vmatprep.mubr.msk.bf16.mxu0 %vm2711_vm1, %v2710_v16  ;;  %vm1029_vm2 = vcmask 64512   ;;  %s2712_s13 = smov 120   ;;  %s3509_s19 = sld [smem:[#allocation45_spill]]  ;;  %vm1091_vm3 = vcmask 1043456  }
 0x165   : > { %s2714_s6 = smov 112   ;;  %s2715_s24 = smov 104  }
 0x166   : > { %764 = vadd.xlane.f32.xlu0 %v763_v3  ;;  %v2254_v15 = vld [vmem:[%s3506_s9] sm:$0xff]   ;;  %2007 = vmatpush3.bf16.msra.mxu1 %v2255_v17  ;;  %v2256_v18 = vld [vmem:[%s3506_s9 + $0x8] sm:$0xff]   ;;  %v1018_v3 = vlaneseq  ;;  %s3510_s22 = sld [smem:[#allocation29_spill]]  ;;  %s3511_s4 = sld [smem:[#allocation46_spill]] }
 0x167   : > { %1997 = vmatpush3.bf16.msra.mxu0 %v2254_v15  ;;  %2020 = vmatprep.subr.bf16.mxu1 %v2710_v16  ;;  %s3512_s27 = sld [smem:[#allocation33_spill]]  ;;  %s3513_s30 = sld [smem:[#allocation47_spill]] }
 0x168   : > { %1998 = vmatprep.subr.bf16.mxu0 %v2710_v16  ;;  %v1930_v29 = vld [vmem:[%s3507_s16] ss:$0 sm:$0xff]  ;;  %v2258_v40 = vld [vmem:[%s3508_s3 + $0x8] sm:$0xff]   ;;  %s756_s16 = scalar_lea.vmem [#allocation20], %s3174_s29  ;;  %s2716_s29 = smov [#allocation20]  }
 0x169   : > { %v2257_v38 = vld [vmem:[%s3508_s3] sm:$0xff]   ;;  %s1699_s8 = sshll.u32 %s756_s16, 4  ;;  %s2597_s0 = sshll.u32 %s2716_s29, 4  ;;  %s3361_s8 = int_to_ptr.vmem [resolvable:$true] %s1699_s8  ;;  %s2598_s0 = int_to_ptr.vmem [resolvable:$false] %s2597_s0 }
 0x16a   : > { %v1942_v56 = vld [vmem:[%s3509_s19] ss:$0 sm:$0xff]  ;;  %s2593_s14 = scalar_lea.vmem %s3361_s8, 128  ;;  %s2599_s19 = scalar_lea.vmem %s2598_s0, 256 }
 0x16b   : > { %1999 = vmatpush3.bf16.msra.mxu0 %v2256_v18  ;;  %p2594_p5 = scmp.ne.s32.totalorder %s3361_s8, %s2593_s14  ;;  %p2600_p10 = scmp.lt.s32.totalorder %s3361_s8, %s2598_s0 }
 0x16c   : > { %2012 = vmatprep.subr.bf16.mxu0 %v2710_v16  ;;  %s1960_s18 = sshll.u32 %s3510_s22, 7  ;;  %p2601_p6 = scmp.lt.s32.totalorder %s2599_s19, %s2593_s14 }
 0x16d   : > { %p3514_p9 = scmp.ne.s32.totalorder %s3512_s27, 0 }
 0x16e   : > { %p2602_p13 = por %p2601_p6, %p2600_p10 }
 0x16f   : > { %p2595_p2 = pnand %p2594_p5, %p3514_p9 }
 0x171   : > { %p2596_p7 = pneg %p2595_p2 }
 0x173   : > { %p2603_p4 = pnand %p2602_p13, %p2596_p7 }
 0x1ef   : > { %v795_v4 = vpop.xlane.xlu0 %794 }
 0x1f0   : > { %v796_v5 = vmul.f32 0.03125, %v795_v4  ;;  %v1019_v4 = vshrl.u32 %v1018_v3, 7 }
 0x1f2   : > { %v797_v6 = vsub.f32 %v759_v0, %v796_v5  ;;  %v1023_v5 = vand.u32 127, %v1018_v3 }
 0x1f3   : > { %v765_v7 = vpop.xlane.xlu0 %764 }
 0x1f4   : > { %v767_v8 = vmul.f32 0.03125, %v765_v7  ;;  %v798_v9 = vmul.f32 %v797_v6, %v797_v6  ;;  %vm1024_vm4 = vcmp.le.s32.totalorder %v1023_v5, %v1019_v4  ;;  %v2713_v7 = vmov -1e+30  }
 0x1f6   : > { %v768_v10 = vsub.f32 %v758_v1, %v767_v8  ;;  %v799_v11 = vsel %vm762_vm0, %v798_v9, 0.0  ;;  %v3279_v8 = vsel %vm1024_vm4, 0.0, %v2713_v7 }
 0x1f7   : > { %800 = vadd.xlane.f32.xlu1 %v799_v11 }
 0x1f8   : > { %v769_v12 = vmul.f32 %v768_v10, %v768_v10 }
 0x1fa   : > { %v770_v13 = vsel %vm762_vm0, %v769_v12, 0.0 }
 0x1fb   : > { %771 = vadd.xlane.f32.xlu1 %v770_v13 }
 0x284   : > { %v801_v19 = vpop.xlane.xlu1 %800 }
 0x285   : > { %v802_v20 = vmul.f32 0.03125, %v801_v19 }
 0x287   : > { %v803_v21 = vadd.f32 1e-05, %v802_v20 }
 0x288   : > { %v772_v22 = vpop.xlane.xlu1 %771 }
 0x289   : > { %2259 = vrsqrt.f32 %v803_v21  ;;  %v773_v23 = vmul.f32 0.03125, %v772_v22 }
 0x28b   : > { %v774_v24 = vadd.f32 1e-05, %v773_v23 }
 0x28d   : > { %2261 = vrsqrt.f32 %v774_v24 }
 0x293   : > { %v2260_v26 = vpop.eup %2259 }
 0x294   : > { %v811_v27 = vmul.f32 %v2260_v26, %v1932_v25 }
 0x296   : > { %v812_v30 = vmul.f32 %v811_v27, %v797_v6 }
 0x297   : > { %v2262_v31 = vpop.eup %2261 }
 0x298   : > { %v819_v32 = vadd.f32 %v1933_v28, %v812_v30  ;;  %v782_v33 = vmul.f32 %v2262_v31, %v1930_v29 }
 0x29a   : > { %v821_v35 = vpack.c.bf16 %v819_v32, %v819_v32  ;;  %v783_v36 = vmul.f32 %v782_v33, %v768_v10 }
 0x29c   : > { %2009 = vmatmul.mubr.msk.bf16.vlgmr.msra.gmra.mrb[0].mxu1 %vm762_vm0, %v821_v35  ;;  %v790_v37 = vadd.f32 %v1931_v34, %v783_v36  ;;  %v1138_v34 = vld [vmem:[#allocation19] sm:$0xf] }
 0x29d   : > { %2022 = vmatprep.mubr.msk.bf16.mxu1 %vm2711_vm1, %v2710_v16 }
 0x29e   : > { %v820_v39 = vpack.c.bf16 %v790_v37, %v790_v37 }
 0x2a0   : > { %2001 = vmatmul.mubr.msk.bf16.vlgmr.msra.gmra.mrb[0].mxu0 %vm762_vm0, %v820_v39  ;;  %v1256_v39 = vld [vmem:[#allocation19 + $0x4] sm:$0xf] }
 0x2a1   : > { %2013 = vmatpush3.bf16.msra.mxu0 %v2257_v38  ;;  %2016 = vmatprep.mubr.msk.bf16.mxu0 %vm2711_vm1, %v2710_v16  ;;  %v1307_v38 = vsel %vm1091_vm3, %v1138_v34, 0 }
 0x2a2   : > { %2014 = vmatprep.subr.bf16.mxu0 %v2710_v16 }
 0x2a5   : > { %2015 = vmatpush3.bf16.msra.mxu0 %v2258_v40  ;;  %v1261_v40 = vsel %vm1091_vm3, %v1256_v39, 0 }
 0x2a6   : > { %2026 = vmatprep.subr.bf16.mxu0 %v2710_v16 }
 0x2a8   : > { %2017 = vmatmul.mubr.msk.bf16.vlgmr.msra.gmra.mrb[4].mxu0 %vm762_vm0, %v821_v35 }
 0x2a9   : > { %2028 = vmatprep.mubr.msk.bf16.mxu0 %vm2711_vm1, %v2710_v16 }
 0x36f   : > { %v948_v42 = vpop.f32.mrb[0].mxu1 }
 0x370   : > { %v949_v43 = vadd.f32 %v1938_v41, %v948_v42  ;;  %v2010_v44 = vpop.f32.mrb[1].mxu1 }
 0x371   : > { %v951_v45 = vpop.f32.mrb[2].mxu1 }
 0x372   : > { %v3251_v47 = vpack.c.bf16 %v949_v43, %v949_v43  ;;  %v2011_v48 = vpop.f32.mrb[3].mxu1 }
 0x373   : > { %v882_v49 = vpop.f32.mrb[0].mxu0 }
 0x374   : > { %v883_v50 = vadd.f32 %v1934_v46, %v882_v49  ;;  %1143 = vrot.lane.b32.xlu0 %v3251_v47, %s2712_s13  ;;  %v2002_v51 = vpop.f32.mrb[1].mxu0  ;;  %v1034_v52 = vsel %vm1029_vm2, %v3251_v47, 0 }
 0x375   : > { %v885_v53 = vpop.f32.mrb[2].mxu0  ;;  %2021 = vmatpush3.bf16.xpose.msra.mxu1 %v1034_v52 }
 0x376   : > { %v3257_v54 = vpack.c.bf16 %v883_v50, %v883_v50  ;;  %v2003_v55 = vpop.f32.mrb[3].mxu0  ;;  %2032 = vmatprep.subr.bf16.mxu1 %v2710_v16 }
 0x378   : > { %1140 = vrot.lane.b32.xlu1 %v3257_v54, %s2712_s13 }
 0x37b   : > { %v1011_v57 = vpop.f32.mrb[4].mxu0 }
 0x37c   : > { %v1012_v58 = vadd.f32 %v1942_v56, %v1011_v57  ;;  %v2018_v59 = vpop.f32.mrb[5].mxu0  ;;  %2023 = vmatmul.mubr.msk.bf16.vlgmr.msra.gmra.mrb[4].mxu1 %vm1029_vm2, %v3257_v54 }
 0x37d   : > { %v1014_v60 = vpop.f32.mrb[6].mxu0  ;;  %2034 = vmatprep.mubr.msk.bf16.mxu1 %vm2711_vm1, %v2710_v16 }
 0x37e   : > { %v3269_v61 = vpack.c.bf16 %v1012_v58, %v1012_v58  ;;  %v2019_v62 = vpop.f32.mrb[7].mxu0 }
 0x380   : > { %v1093_v63 = vsel %vm1091_vm3, %v3269_v61, 0 }
 0x381   : > { %2027 = vmatpush3.bf16.msra.mxu0 %v1093_v63 }
 0x382   : > { %2038 = vmatprep.subr.bf16.mxu0 %v2710_v16 }
 0x3e6   : > { %v1144_v0 = vpop.permute.xlu0 %1143 }
 0x3e7   : > { %v1149_v1 = vsel %vm1029_vm2, %v1144_v0, 0 }
 0x3e8   : > { %2033 = vmatpush3.bf16.xpose.msra.mxu1 %v1149_v1 }
 0x3e9   : > { %2044 = vmatprep.subr.bf16.mxu1 %v2710_v16 }
 0x3ea   : > { %v1141_v2 = vpop.permute.xlu1 %1140 }
 0x3ef   : > { %2035 = vmatmul.mubr.msk.bf16.vlgmr.msra.gmra.mrb[8].mxu1 %vm1029_vm2, %v1141_v2 }
 0x3f0   : > { %2046 = vmatprep.mubr.msk.bf16.mxu1 %vm2711_vm1, %v2710_v16  ;;  %2045 = vmatpush3.bf16.msra.mxu1 %v1261_v40 }
 0x3f1   : > { %2056 = vmatprep.subr.bf16.mxu1 %v2710_v16 }
 0x44f   : > { %v1070_v6 = vpop.f32.mrb[4].mxu1 }
 0x450   : > { %v1076_v9 = vmul.f32 0.35355338, %v1070_v6  ;;  %v2024_v10 = vpop.f32.mrb[5].mxu1 }
 0x451   : > { %v1073_v11 = vpop.f32.mrb[6].mxu1 }
 0x452   : > { %v2025_v12 = vpop.f32.mrb[7].mxu1  ;;  %v1077_v13 = vadd.f32 %v1076_v9, %v3279_v8 }
 0x454   : > { %v1078_v14 = vsel %vm1029_vm2, %v1077_v13, -inf }
 0x455   : > { %1079 = vmax.xlane.f32.xlu1 %v1078_v14 }
 0x4c2   : > { %v1185_v15 = vpop.f32.mrb[8].mxu1 }
 0x4c3   : > { %v1191_v17 = vmul.f32 0.35355338, %v1185_v15  ;;  %v2036_v18 = vpop.f32.mrb[9].mxu1 }
 0x4c4   : > { %v1188_v19 = vpop.f32.mrb[10].mxu1 }
 0x4c5   : > { %v2037_v20 = vpop.f32.mrb[11].mxu1  ;;  %v1192_v21 = vadd.f32 %v1191_v17, %v3279_v8 }
 0x4c7   : > { %v1193_v22 = vsel %vm1029_vm2, %v1192_v21, -inf }
 0x4c8   : > { %1194 = vmax.xlane.f32.xlu0 %v1193_v22 }
 0x4de   : > { %1204 = vrot.lane.b32.xlu0 %v3269_v61, %s2712_s13  ;;  %s3359_s13 = scalar_lea.hbm %s3513_s30, %s1960_s18 }
 0x4e2   : > { %v1080_v23 = vpop.xlane.xlu1 %1079 }
 0x4e3   : > { %v1081_v24 = vsub.f32 %v1077_v13, %v1080_v23 }
 0x4e5   : > { %v1082_v25 = vmul.f32 1.442695, %v1081_v24 }
 0x4e7   : > { %2263 = vpow2.f32 %v1082_v25 }
 0x4f1   : > { %v2264_v26 = vpop.eup %2263 }
 0x4f2   : > { %v1087_v27 = vpack.c.bf16 %v2264_v26, %v2264_v26  ;;  %v1084_v28 = vsel %vm1029_vm2, %v2264_v26, 0.0  ;;  %v1463_v26 = vld [vmem:[#allocation19 + $0x8] sm:$0xf] }
 0x4f4   : > { %2029 = vmatmul.mubr.msk.bf16.vlgmr.msra.gmra.mrb[8].mxu0 %vm1029_vm2, %v1087_v27  ;;  %v1468_v27 = vsel %vm1091_vm3, %v1463_v26, 0 }
 0x4f5   : > { %2040 = vmatprep.mubr.msk.bf16.mxu0 %vm2711_vm1, %v2710_v16 }
 0x4fd   : > { %1085 = vadd.xlane.f32.xlu0 %v1084_v28 }
 0x513   : > { %1411 = vrot.lane.b32.xlu0 %v3269_v61, %s2714_s6 }
 0x517   : > { %1511 = vrot.lane.b32.xlu0 %v3257_v54, %s2715_s24 }
 0x555   : > { %v1195_v29 = vpop.xlane.xlu0 %1194 }
 0x556   : > { %v1196_v30 = vsub.f32 %v1192_v21, %v1195_v29 }
 0x558   : > { %v1197_v31 = vmul.f32 1.442695, %v1196_v30 }
 0x559   : > { %v1205_v32 = vpop.permute.xlu0 %1204 }
 0x55a   : > { %2265 = vpow2.f32 %v1197_v31  ;;  %v1210_v33 = vsel %vm1091_vm3, %v1205_v32, 0 }
 0x55b   : > { %2039 = vmatpush3.bf16.msra.mxu0 %v1210_v33 }
 0x55c   : > { %2050 = vmatprep.subr.bf16.mxu0 %v2710_v16 }
 0x564   : > { %v2266_v35 = vpop.eup %2265 }
 0x565   : > { %v1199_v36 = vsel %vm1029_vm2, %v2266_v35, 0.0  ;;  %v1202_v37 = vpack.c.bf16 %v2266_v35, %v2266_v35 }
 0x566   : > { %1200 = vadd.xlane.f32.xlu1 %v1199_v36 }
 0x567   : > { %2041 = vmatmul.mubr.msk.bf16.vlgmr.msra.gmra.mrb[12].mxu0 %vm1029_vm2, %v1202_v37 }
 0x568   : > { %2051 = vmatpush3.bf16.msra.mxu0 %v1307_v38  ;;  %2052 = vmatprep.mubr.msk.bf16.mxu0 %vm2711_vm1, %v2710_v16 }
 0x569   : > { %2062 = vmatprep.subr.bf16.mxu0 %v2710_v16 }
 0x577   : > { %1351 = vrot.lane.b32.xlu1 %v3251_v47, %s2714_s6 }
 0x57b   : > { %1349 = vrot.lane.b32.xlu1 %v3257_v54, %s2714_s6 }
 0x58a   : > { %v1086_v41 = vpop.xlane.xlu0 %1085 }
 0x58b   : > { %2267 = vrcp.f32 %v1086_v41 }
 0x58e   : > { %v1412_v46 = vpop.permute.xlu0 %1411 }
 0x58f   : > { %v1417_v51 = vsel %vm1091_vm3, %v1412_v46, 0 }
 0x595   : > { %v2268_v42 = vpop.eup %2267 }
 0x5c7   : > { %v1129_v43 = vpop.f32.mrb[8].mxu0 }
 0x5c8   : > { %v1136_v44 = vmul.f32 %v2268_v42, %v1129_v43  ;;  %v2030_v45 = vpop.f32.mrb[9].mxu0 }
 0x5c9   : > { %v1132_v48 = vpop.f32.mrb[10].mxu0 }
 0x5ca   : > { %v1137_v49 = vpack.c.bf16 %v1136_v44, %v1136_v44  ;;  %v2031_v50 = vpop.f32.mrb[11].mxu0 }
 0x5cc   : > { %2053 = vmatmul.mubr.msk.bf16.vlgmr.msra.gmra.mrb[16].mxu0 %vm1029_vm2, %v1137_v49 }
 0x5cd   : > { %2063 = vmatpush3.bf16.msra.mxu0 %v1417_v51  ;;  %2064 = vmatprep.mubr.msk.bf16.mxu0 %vm2711_vm1, %v2710_v16 }
 0x5ce   : > { %2074 = vmatprep.subr.bf16.mxu0 %v2710_v16 }
 0x5f3   : > { %v1201_v52 = vpop.xlane.xlu1 %1200 }
 0x5f4   : > { %2269 = vrcp.f32 %v1201_v52 }
 0x5f7   : > { %v1352_v57 = vpop.permute.xlu1 %1351 }
 0x5f8   : > { %v1357_v62 = vsel %vm1029_vm2, %v1352_v57, 0 }
 0x5fb   : > { %v1350_v63 = vpop.permute.xlu1 %1349 }
 0x5fe   : > { %v2270_v53 = vpop.eup %2269 }
 0x63a   : > { %v1246_v54 = vpop.f32.mrb[12].mxu0 }
 0x63b   : > { %v1253_v55 = vmul.f32 %v2270_v53, %v1246_v54  ;;  %v2042_v56 = vpop.f32.mrb[13].mxu0 }
 0x63c   : > { %v1249_v58 = vpop.f32.mrb[14].mxu0 }
 0x63d   : > { %v1254_v59 = vpack.c.bf16 %v1253_v55, %v1253_v55  ;;  %v2043_v60 = vpop.f32.mrb[15].mxu0 }
 0x63f   : > { %2047 = vmatmul.mubr.msk.bf16.vlgmr.msra.gmra.mrb[12].mxu1 %vm1029_vm2, %v1254_v59 }
 0x640   : > { %2057 = vmatpush3.bf16.xpose.msra.mxu1 %v1357_v62  ;;  %2058 = vmatprep.mubr.msk.bf16.mxu1 %vm2711_vm1, %v2710_v16 }
 0x641   : > { %2068 = vmatprep.subr.bf16.mxu1 %v2710_v16 }
 0x647   : > { %2059 = vmatmul.mubr.msk.bf16.vlgmr.msra.gmra.mrb[16].mxu1 %vm1029_vm2, %v1350_v63 }
 0x648   : > { %2070 = vmatprep.mubr.msk.bf16.mxu1 %vm2711_vm1, %v2710_v16  ;;  %2069 = vmatpush3.bf16.msra.mxu1 %v1468_v27 }
 0x649   : > { %2080 = vmatprep.subr.bf16.mxu1 %v2710_v16 }
 0x69f   : > { %v1343_v0 = vpop.f32.mrb[16].mxu0 }
 0x6a0   : > { %v2054_v1 = vpop.f32.mrb[17].mxu0 }
 0x6a1   : > { %v1346_v2 = vpop.f32.mrb[18].mxu0 }
 0x6a2   : > { %v2055_v3 = vpop.f32.mrb[19].mxu0  ;;  %v1958_v2 = vld [vmem:[%s3511_s4] ss:$0 sm:$0xff] }
 0x712   : > { %v1297_v4 = vpop.f32.mrb[12].mxu1 }
 0x713   : > { %v3319_v5 = vadd.f32 %v1343_v0, %v1297_v4  ;;  %v2048_v6 = vpop.f32.mrb[13].mxu1 }
 0x714   : > { %v1300_v7 = vpop.f32.mrb[14].mxu1 }
 0x715   : > { %v2049_v9 = vpop.f32.mrb[15].mxu1 }
 0x71a   : > { %v1393_v10 = vpop.f32.mrb[16].mxu1 }
 0x71b   : > { %v1399_v11 = vmul.f32 0.35355338, %v1393_v10  ;;  %v2060_v12 = vpop.f32.mrb[17].mxu1 }
 0x71c   : > { %v1396_v13 = vpop.f32.mrb[18].mxu1 }
 0x71d   : > { %v2061_v14 = vpop.f32.mrb[19].mxu1  ;;  %v1400_v15 = vadd.f32 %v1399_v11, %v3279_v8 }
 0x71f   : > { %v1401_v17 = vsel %vm1029_vm2, %v1400_v15, -inf }
 0x720   : > { %1402 = vmax.xlane.f32.xlu1 %v1401_v17 }
 0x731   : > { %1513 = vrot.lane.b32.xlu1 %v3251_v47, %s2715_s24  ;;  %v1512_v47 = vpop.permute.xlu0 %1511 }
 0x7ad   : > { %v1403_v18 = vpop.xlane.xlu1 %1402 }
 0x7ae   : > { %v1404_v19 = vsub.f32 %v1400_v15, %v1403_v18 }
 0x7b0   : > { %v1405_v20 = vmul.f32 1.442695, %v1404_v19 }
 0x7b1   : > { %v1514_v22 = vpop.permute.xlu1 %1513 }
 0x7b2   : > { %2271 = vpow2.f32 %v1405_v20  ;;  %v1519_v25 = vsel %vm1029_vm2, %v1514_v22, 0 }
 0x7bc   : > { %v2272_v21 = vpop.eup %2271 }
 0x7bd   : > { %v1407_v23 = vsel %vm1029_vm2, %v2272_v21, 0.0  ;;  %v1410_v24 = vpack.c.bf16 %v2272_v21, %v2272_v21 }
 0x7be   : > { %1408 = vadd.xlane.f32.xlu1 %v1407_v23 }
 0x7bf   : > { %2065 = vmatmul.mubr.msk.bf16.vlgmr.msra.gmra.mrb[20].mxu0 %vm1029_vm2, %v1410_v24 }
 0x7c0   : > { %2075 = vmatpush3.bf16.xpose.msra.mxu0 %v1519_v25  ;;  %2076 = vmatprep.mubr.msk.bf16.mxu0 %vm2711_vm1, %v2710_v16 }
 0x7c1   : > { %2086 = vmatprep.subr.bf16.mxu0 %v2710_v16 }
 0x7c7   : > { %2077 = vmatmul.mubr.msk.bf16.vlgmr.msra.gmra.mrb[24].mxu0 %vm1029_vm2, %v1512_v47 }
 0x7c8   : > { %2088 = vmatprep.mubr.msk.bf16.mxu0 %vm2711_vm1, %v2710_v16 }
 0x84b   : > { %v1409_v28 = vpop.xlane.xlu1 %1408 }
 0x84c   : > { %2273 = vrcp.f32 %v1409_v28 }
 0x856   : > { %v2274_v29 = vpop.eup %2273 }
 0x892   : > { %v1453_v30 = vpop.f32.mrb[20].mxu0 }
 0x893   : > { %v1460_v31 = vmul.f32 %v2274_v29, %v1453_v30  ;;  %v2066_v32 = vpop.f32.mrb[21].mxu0 }
 0x894   : > { %v1456_v33 = vpop.f32.mrb[22].mxu0 }
 0x895   : > { %v1461_v34 = vpack.c.bf16 %v1460_v31, %v1460_v31  ;;  %v2067_v35 = vpop.f32.mrb[23].mxu0 }
 0x897   : > { %2071 = vmatmul.mubr.msk.bf16.vlgmr.msra.gmra.mrb[20].mxu1 %vm1029_vm2, %v1461_v34 }
 0x898   : > { %2082 = vmatprep.mubr.msk.bf16.mxu1 %vm2711_vm1, %v2710_v16 }
 0x89a   : > { %v1555_v36 = vpop.f32.mrb[24].mxu0 }
 0x89b   : > { %v1561_v37 = vmul.f32 0.35355338, %v1555_v36  ;;  %v2078_v38 = vpop.f32.mrb[25].mxu0 }
 0x89c   : > { %v1558_v39 = vpop.f32.mrb[26].mxu0 }
 0x89d   : > { %v2079_v40 = vpop.f32.mrb[27].mxu0  ;;  %v1562_v41 = vadd.f32 %v1561_v37, %v3279_v8  ;;  %v1625_v8 = vld [vmem:[#allocation19 + $0xc] sm:$0xf] }
 0x89e   : > { %v1630_v51 = vsel %vm1091_vm3, %v1625_v8, 0 }
 0x89f   : > { %v1563_v42 = vsel %vm1029_vm2, %v1562_v41, -inf  ;;  %2087 = vmatpush3.bf16.msra.mxu0 %v1630_v51 }
 0x8a0   : > { %1564 = vmax.xlane.f32.xlu0 %v1563_v42 }
 0x8b6   : > { %1573 = vrot.lane.b32.xlu0 %v3269_v61, %s2715_s24 }
 0x92d   : > { %v1565_v43 = vpop.xlane.xlu0 %1564 }
 0x92e   : > { %v1566_v44 = vsub.f32 %v1562_v41, %v1565_v43 }
 0x930   : > { %v1567_v45 = vmul.f32 1.442695, %v1566_v44 }
 0x931   : > { %v1574_v46 = vpop.permute.xlu0 %1573 }
 0x932   : > { %2275 = vpow2.f32 %v1567_v45  ;;  %v1579_v16 = vsel %vm1091_vm3, %v1574_v46, 0 }
 0x933   : > { %2081 = vmatpush3.bf16.msra.mxu1 %v1579_v16 }
 0x93c   : > { %v2276_v48 = vpop.eup %2275 }
 0x93d   : > { %v1569_v49 = vsel %vm1029_vm2, %v2276_v48, 0.0  ;;  %v1572_v50 = vpack.c.bf16 %v2276_v48, %v2276_v48 }
 0x93e   : > { %1570 = vadd.xlane.f32.xlu1 %v1569_v49 }
 0x93f   : > { %2083 = vmatmul.mubr.msk.bf16.vlgmr.msra.gmra.mrb[24].mxu1 %vm1029_vm2, %v1572_v50 }
 0x96a   : > { %v1504_v61 = vpop.f32.mrb[20].mxu1 }
 0x96b   : > { %v1510_v52 = vadd.f32 %v1504_v61, %v3319_v5  ;;  %v2072_v53 = vpop.f32.mrb[21].mxu1  ;;  %v1681_v5 = vld [vmem:[%s664_s21] sm:$0xff]  ;;  %s1685_s21 = scalar_lea.sflag [#allocation4], %s3171_s28 }
 0x96c   : > { %v1507_v54 = vpop.f32.mrb[22].mxu1 }
 0x96d   : > { %v2073_v55 = vpop.f32.mrb[23].mxu1 }
 0x9cb   : > { %v1571_v56 = vpop.xlane.xlu1 %1570 }
 0x9cc   : > { %2277 = vrcp.f32 %v1571_v56 }
 0x9d6   : > { %v2278_v57 = vpop.eup %2277 }
 0xa12   : > { %v1615_v58 = vpop.f32.mrb[24].mxu1 }
 0xa13   : > { %v1622_v59 = vmul.f32 %v2278_v57, %v1615_v58  ;;  %v2084_v60 = vpop.f32.mrb[25].mxu1 }
 0xa14   : > { %v1618_v62 = vpop.f32.mrb[26].mxu1 }
 0xa15   : > { %v1623_v63 = vpack.c.bf16 %v1622_v59, %v1622_v59  ;;  %v2085_v0 = vpop.f32.mrb[27].mxu1 }
 0xa17   : > { %2089 = vmatmul.mubr.msk.bf16.vlgmr.msra.gmra.mrb[28].mxu0 %vm1029_vm2, %v1623_v63 }
 0xaea   : > { %v1666_v1 = vpop.f32.mrb[28].mxu0 }
 0xaeb   : > { %v1672_v3 = vadd.f32 %v1666_v1, %v1510_v52  ;;  %v2090_v4 = vpop.f32.mrb[29].mxu0 }
 0xaec   : > { %v1669_v6 = vpop.f32.mrb[30].mxu0 }
 0xaed   : > { %v1680_v7 = vadd.f32 %v1958_v2, %v1672_v3  ;;  %v2091_v9 = vpop.f32.mrb[31].mxu0 }
 0xaef   : > { %v1682_v10 = vadd.f32 %v1681_v5, %v1680_v7 }
 0xaf1   : > { %1683 = vst.msk [vmem:[%s756_s16] sm:$0xff] %vm762_vm0, %v1682_v10 }
 0xaf2   : > { %2606 = shalt.err (!%p2603_p4)
}
 0xaf3   : > { %s2607_s28 = scalar_lea.hbm %s3359_s13, 128  ;;  %s2611_s22 = scalar_lea.hbm %s3513_s30, 256 }
 0xaf4   : > { %p2608_p3 = scmp.ne.s32.totalorder %s3359_s13, %s2607_s28  ;;  %p2612_p8 = scmp.lt.u32.totalorder %s3359_s13, %s3513_s30 }
 0xaf5   : > { %p2613_p1 = scmp.lt.u32.totalorder %s2611_s22, %s2607_s28  ;;  %p2615_p5 = scmp.lt.u32.totalorder %s2607_s28, %s3359_s13 }
 0xaf6   : > { %p2609_p11 = pnand %p2608_p3, %p3514_p9 }
 0xaf7   : > { %p2614_p0 = por %p2613_p1, %p2612_p8 }
 0xaf8   : > { %p2610_p12 = pneg %p2609_p11 }
 0xaf9   : > { %p2616_p2 = por %p2615_p5, %p2614_p0 }
 0xafb   : > { %p2617_p7 = pnand %p2616_p2, %p2610_p12 }
 0xafd   : > { %2620 = shalt.err (!%p2617_p7)
}
 0xafe   : > { %2130 = dma.vmem_to_hbm [thread:$0]  (%p3514_p9), %s3361_s8, 128, %s3359_s13, %s1685_s21  }
 0xaff PF: > { %s3515_s4 = sld [smem:[#allocation28_spill]]  ;;  %s3516_s18 = sld [smem:[#allocation35_spill]] }
 0xb00   : > { %s3517_s16 = sld [smem:[#allocation31_spill]] }
 0xb05   : > { %s1711_s12 = sand.u32 1, %s3515_s4   ;;  %p3518_p10 = scmp.ne.s32.totalorder %s3516_s18, 0 }
 0xb06   : > { %p3519_p6 = scmp.ge.s32.totalorder %s3517_s16, 2  ;;  %s1712_s23 = scalar_lea.sflag [#allocation4], %s1711_s12 }
 0xb08   : > { %p2168_p13 = pnand %p3519_p6, %p3518_p10 }
 0xb0a   : > { %2670 = dma.done.wait (!%p2168_p13), %s1712_s23, 128  }
 0xb0b   : > { %2672 = vsyncadd (!%p2168_p13), %s1712_s23, 4294967168  ;;  %s40_s29 = sadd.s32 1, %s3517_s16   ;;  %s3520_s27 = sld [smem:[#allocation34_spill]] }
 0xb0c   : > { %p37_p4 = scmp.ge.s32.totalorder %s40_s29, 4   ;;  %s3521_s14 = sld [smem:[#allocation30_spill]] }
 0xb0d   : > { %s3522_s28 = sld [smem:[#allocation32_spill]]  ;;  %s3523_s24 = smov %s2679_s25 }
 0xb0e   : > { %s3524_s25 = smov %s2683_s26  ;;  %39 = sbr.rel (!%p37_p4) target bundleno = 25 (0x19), region = 192 }
 0xb11   : > { %s3525_s26 = smov %s3520_s27 }
 0xb12   : > { %s3526_s27 = smov %s3521_s14 }
 0xb15   :  { %1717 = vsyncpa [#allocation3], 1 }
 0xb16   :  { %1719 = vsyncpa [#allocation3 + $0x1], 1 }
 0xb17   :  { %1720 = vsyncpa [#allocation6], 1 }
 0xb18   :  { %1722 = vsyncpa [#allocation6 + $0x1], 1 }
 0xb19   :  { %1723 = vsyncpa [#allocation9], 1 }
 0xb1a   :  { %1724 = vsyncpa [#allocation12], 1 }
 0xb1b   :  { %1725 = vsyncpa [#allocation15], 1 }
 0xb1c   :  { %1726 = vsyncpa [#allocation18], 1 }
 0xb1d   :  { %1727 = vsyncpa [#allocation4], 1 }
 0xb1e   :  { %1729 = vsyncpa [#allocation4 + $0x1], 1 }

</bundles_post_ra>
